<compile_context>
chip_gen: v7x
topology: tpu7x:2x2x1
jax: 0.10.0
libtpu: 0.0.40
codegen_flags: <defaults>
</compile_context>

<pallas_src>
import functools

import jax
import jax.numpy as jnp
from jax import lax
from jax.experimental import pallas as pl
from jax.experimental.pallas import tpu as pltpu


# ----------------------------------------------------------------------------
# small helpers
# ----------------------------------------------------------------------------

_VMEM_LIMIT = 64 * 1024 * 1024


def _choose_tile(P):
    """Largest lane-friendly pixel tile that divides P (falls back to full P)."""
    for t in (2048, 1024, 512, 256, 128):
        if P % t == 0:
            return t
    return P


# ----------------------------------------------------------------------------
# Pallas kernel 1: 3x3 conv (stride 1, pad 1) with fused bias/ReLU + BN partials
# ----------------------------------------------------------------------------
#
# Input layout trick: the activation is zero-padded to (H+3, W+2), flattened to
# ((H+3)*(W+2), Cin).  For tap (kh, kw) the operand of the matmul is the contiguous
# row slice starting at kh*(W+2)+kw of length H*(W+2) — so the 9 taps are 9 plain
# 2-D slices of the same VMEM block, no reshapes, no im2col.  Output rows whose
# column index (mod W+2) >= W are garbage and are masked to zero.

def _conv3x3_kernel(x_ref, w_ref, b_ref, m_ref, y_ref, s_ref, *, H, W, Cin, Cout, relu):
    Wp = W + 2
    rows = H * Wp
    acc = jnp.zeros((rows, Cout), jnp.float32)
    for t in range(9):                                   # static unroll: 9 MXU matmuls
        kh, kw = divmod(t, 3)
        start = kh * Wp + kw
        a = x_ref[0, start:start + rows, :]              # (rows, Cin) bf16
        wt = w_ref[t * Cin:(t + 1) * Cin, :]             # (Cin, Cout) bf16
        acc = acc + jnp.dot(a, wt, preferred_element_type=jnp.float32)
    acc = acc + b_ref[...]                               # fused bias
    if relu:
        acc = jnp.maximum(acc, 0.0)                      # fused ReLU (bn=False layers)
    acc = acc * m_ref[...]                               # zero the W-pad garbage columns
    y_ref[0] = acc
    # per-batch channel sum / sumsq over valid pixels (garbage cols are exactly 0)
    s_ref[0, 0:1, :] = jnp.sum(acc, axis=0, keepdims=True)
    s_ref[0, 1:2, :] = jnp.sum(acc * acc, axis=0, keepdims=True)


def conv3x3_bn_relu(x_nhwc, p, bn=True):
    """PyTorch conv_bn_relu forward.  x: (B, H, W, Cin) f32 -> (B, H, W, Cout) f32."""
    B, H, W, Cin = x_nhwc.shape
    Cout = p['w'].shape[0]
    Wp = W + 2
    PR = (H + 3) * Wp                                    # padded rows per image (flat)
    RO = H * Wp                                          # output rows per image (flat)

    # zero pad: 1 top / 2 bottom (extra row covers the last tap's overrun), 1 left/right
    xp = jnp.pad(x_nhwc, ((0, 0), (1, 2), (1, 1), (0, 0)))
    xp = xp.reshape(B, PR, Cin).astype(jnp.bfloat16)     # bf16 MXU operand, halves DMA
    w_mat = jnp.transpose(p['w'], (2, 3, 1, 0)).reshape(9 * Cin, Cout).astype(jnp.bfloat16)
    bias = p['b'].reshape(1, Cout).astype(jnp.float32)
    col = jnp.arange(RO, dtype=jnp.int32) % Wp
    mask = (col < W).astype(jnp.float32).reshape(RO, 1)

    kern = functools.partial(_conv3x3_kernel, H=H, W=W, Cin=Cin, Cout=Cout, relu=not bn)
    y, stats = pl.pallas_call(
        kern,
        out_shape=(jax.ShapeDtypeStruct((B, RO, Cout), jnp.float32),
                   jax.ShapeDtypeStruct((B, 2, Cout), jnp.float32)),
        grid_spec=pltpu.PrefetchScalarGridSpec(
            num_scalar_prefetch=0,
            grid=(B,),                                   # B shards across TensorCores
            in_specs=[
                pl.BlockSpec((1, PR, Cin), lambda b: (b, 0, 0)),
                pl.BlockSpec((9 * Cin, Cout), lambda b: (0, 0)),
                pl.BlockSpec((1, Cout), lambda b: (0, 0)),
                pl.BlockSpec((RO, 1), lambda b: (0, 0)),
            ],
            out_specs=(pl.BlockSpec((1, RO, Cout), lambda b: (b, 0, 0)),
                       pl.BlockSpec((1, 2, Cout), lambda b: (b, 0, 0))),
        ),
        compiler_params=pltpu.CompilerParams(
            dimension_semantics=("parallel",),
            vmem_limit_bytes=_VMEM_LIMIT),
    )(xp, w_mat, bias, mask)
    # TODO(synk): for large images, tile output rows (manual halo DMA) instead of one
    # full-image block per grid step.

    y = y.reshape(B, H, Wp, Cout)[:, :, :W, :]           # drop the W-pad columns
    if bn:
        # BatchNorm2d (training-mode batch statistics, biased var) from fused partials.
        cnt = float(B * H * W)
        mean = jnp.sum(stats[:, 0, :], axis=0) / cnt
        ex2 = jnp.sum(stats[:, 1, :], axis=0) / cnt
        var = ex2 - mean * mean
        y = (y - mean) * lax.rsqrt(var + 1e-5)
        y = y * p['gamma'] + p['beta']
        y = jnp.maximum(y, 0.0)
    return y


# ----------------------------------------------------------------------------
# cnn_module (NHWC throughout)
# ----------------------------------------------------------------------------

def crop_like(x, target):
    if x.shape[1:3] == target.shape[1:3]:
        return x
    return x[:, :target.shape[1], :target.shape[2], :]


def maxpool_3_2_1(x):
    return lax.reduce_window(x, -jnp.inf, lax.max,
                             window_dimensions=(1, 3, 3, 1),
                             window_strides=(1, 2, 2, 1),
                             padding=((0, 0), (1, 1), (1, 1), (0, 0)))


def upsample_nearest(x, s):
    return jnp.repeat(jnp.repeat(x, s, axis=1), s, axis=2)


def cnn_module_forward(params, x):                        # x: (B, H, W, 5)
    conv1 = conv3x3_bn_relu(x, params['conv1'])
    conv2 = conv3x3_bn_relu(conv1, params['conv2'])
    pool1 = maxpool_3_2_1(conv2)
    conv3 = conv3x3_bn_relu(pool1, params['conv3'])
    conv4 = conv3x3_bn_relu(conv3, params['conv4'])
    pool2 = maxpool_3_2_1(conv4)
    conv5 = conv3x3_bn_relu(pool2, params['conv5'])
    conv6 = conv3x3_bn_relu(conv5, params['conv6'])
    conv6_up = upsample_nearest(conv6, 4)
    conv4_up = upsample_nearest(conv4, 2)
    conv2c = crop_like(conv2, x)
    conv4c = crop_like(conv4_up, x)
    conv6c = crop_like(conv6_up, x)
    conv_concat = jnp.concatenate((x, conv2c, conv4c, conv6c), axis=3)   # (B,H,W,197)
    conv7 = conv3x3_bn_relu(conv_concat, params['conv7'], bn=False)
    conv7 = crop_like(conv7, x)
    return jnp.concatenate((x, conv7), axis=3)                           # (B,H,W,20)


def init_cnn_params(key):
    shapes = {'conv1': (64, 5), 'conv2': (64, 64), 'conv3': (64, 64),
              'conv4': (64, 64), 'conv5': (64, 64), 'conv6': (64, 64),
              'conv7': (15, 197)}
    params = {}
    keys = jax.random.split(key, len(shapes))
    for (name, (co, ci)), k in zip(shapes.items(), keys):
        params[name] = {
            'w': 0.05 * jax.random.normal(k, (co, ci, 3, 3), jnp.float32),
            'b': jnp.zeros((co,), jnp.float32),
        }
        if name != 'conv7':
            params[name]['gamma'] = jnp.ones((co,), jnp.float32)
            params[name]['beta'] = jnp.zeros((co,), jnp.float32)
    return params


# ----------------------------------------------------------------------------
# Pallas kernel 2: fused 9-neighbor distance + invisibility mask + softmax
# ----------------------------------------------------------------------------

def _assign_kernel(f_ref, sg_ref, inv_ref, a_ref):
    f = f_ref[0]                                   # (tp, C)  f32
    sg = sg_ref[0]                                 # (9, tp, C) f32 (gathered spixel feats)
    inv = inv_ref[...]                             # (9, tp) f32
    diff = sg - f[None, :, :]
    d = -jnp.sum(diff * diff, axis=2)              # -||f - s||^2  -> (9, tp)
    d = d - 1e10 * inv                             # suppress invisible neighbors (f32!)
    m = jnp.max(d, axis=0, keepdims=True)
    e = jnp.exp(d - m)
    a_ref[0] = e / jnp.sum(e, axis=0, keepdims=True)


def _neighbor_gather(grid_feat, cell_h, cell_w):
    """(B, nh, nw, C) superpixel grid -> (B, 9, P, C) per-pixel 3x3-neighbor features.

    Pure shifts + nearest upsample: exploits the regular SSN grid, no gather op.
    Out-of-range neighbors are zero (they are killed by the invisibility mask)."""
    B, nh, nw, C = grid_feat.shape
    gp = jnp.pad(grid_feat, ((0, 0), (1, 1), (1, 1), (0, 0)))
    shifts = [gp[:, dy:dy + nh, dx:dx + nw, :] for dy in range(3) for dx in range(3)]
    sg = jnp.stack(shifts, axis=1)                                  # (B, 9, nh, nw, C)
    sg = jnp.repeat(jnp.repeat(sg, cell_h, axis=2), cell_w, axis=3)  # (B, 9, H, W, C)
    return sg.reshape(B, 9, nh * cell_h * nw * cell_w, C)


def compute_assignments(sf_grid, f_pc, inv_flat, cell_h, cell_w):
    """Soft pixel->9-neighbor-superpixel assignments.  -> (B, 9, P)."""
    B, P, C = f_pc.shape
    sg = _neighbor_gather(sf_grid, cell_h, cell_w).astype(jnp.float32)
    tp = _choose_tile(P)
    nt = P // tp
    return pl.pallas_call(
        _assign_kernel,
        out_shape=jax.ShapeDtypeStruct((B, 9, P), jnp.float32),
        grid_spec=pltpu.PrefetchScalarGridSpec(
            num_scalar_prefetch=0,
            grid=(B, nt),
            in_specs=[
                pl.BlockSpec((1, tp, C), lambda b, i: (b, i, 0)),
                pl.BlockSpec((1, 9, tp, C), lambda b, i: (b, 0, i, 0)),
                pl.BlockSpec((9, tp), lambda b, i: (0, i)),
            ],
            out_specs=pl.BlockSpec((1, 9, tp), lambda b, i: (b, 0, i)),
        ),
        compiler_params=pltpu.CompilerParams(
            dimension_semantics=("parallel", "parallel"),
            vmem_limit_bytes=_VMEM_LIMIT),
    )(f_pc.astype(jnp.float32), sg, inv_flat)


# ----------------------------------------------------------------------------
# Pallas kernel 3: soft label reconstruction (decode_features weighted sum)
# ----------------------------------------------------------------------------

def _decode_kernel(a_ref, s_ref, o_ref):
    a = a_ref[0]                                   # (9, tp)
    s = s_ref[0]                                   # (9, tp, L)
    o_ref[0] = jnp.sum(a[:, :, None] * s, axis=0)  # (tp, L)


def decode_features(assoc, sl_grid, cell_h, cell_w):
    """recon_label[b, p, :] = sum_n assoc[b,n,p] * spixel_label[b, p2sp[n,p], :]."""
    B, _, P = assoc.shape
    L = sl_grid.shape[-1]
    slg = _neighbor_gather(sl_grid, cell_h, cell_w).astype(jnp.float32)  # (B,9,P,L)
    tp = _choose_tile(P)
    nt = P // tp
    return pl.pallas_call(
        _decode_kernel,
        out_shape=jax.ShapeDtypeStruct((B, P, L), jnp.float32),
        grid_spec=pltpu.PrefetchScalarGridSpec(
            num_scalar_prefetch=0,
            grid=(B, nt),
            in_specs=[pl.BlockSpec((1, 9, tp), lambda b, i: (b, 0, i)),
                      pl.BlockSpec((1, 9, tp, L), lambda b, i: (b, 0, i, 0))],
            out_specs=pl.BlockSpec((1, tp, L), lambda b, i: (b, i, 0)),
        ),
        compiler_params=pltpu.CompilerParams(
            dimension_semantics=("parallel", "parallel"),
            vmem_limit_bytes=_VMEM_LIMIT),
    )(assoc, slg)


# ----------------------------------------------------------------------------
# SSN core (scatter-free, grid-structured JAX glue)
# ----------------------------------------------------------------------------

def spixel_feature_init(feat_pc, nh, nw, cell_h, cell_w):
    """Initial per-superpixel mean feature from the regular grid.  -> (B, nh, nw, C)."""
    B, P, C = feat_pc.shape
    g = feat_pc.reshape(B, nh, cell_h, nw, cell_w, C)
    s = jnp.sum(g, axis=(2, 4))
    return s / (float(cell_h * cell_w) + 1e-10)


def spixel_feature2(feat_pc, assoc, inv_flat, nh, nw, cell_h, cell_w):
    """Association-weighted superpixel features (scatter done as per-cell pooling
    + 3x3 cell shifts — no (9,P,K) one-hot).  -> (B, nh, nw, C)."""
    B, P, C = feat_pc.shape
    w9 = assoc * (1.0 - inv_flat)[None, :, :]                         # (B, 9, P)
    xe = jnp.concatenate([feat_pc, jnp.ones((B, P, 1), jnp.float32)], axis=2)
    w9g = w9.reshape(B, 9, nh, cell_h, nw, cell_w)
    xeg = xe.reshape(B, nh, cell_h, nw, cell_w, C + 1)
    # per-cell weighted pooling; XLA lowers this to a fused batched MXU dot_general.
    pool = jnp.einsum('bnyuxv,byuxvc->bnyxc', w9g, xeg)               # (B,9,nh,nw,C+1)
    s = jnp.zeros((B, nh, nw, C + 1), jnp.float32)
    n = 0
    for dy in (-1, 0, 1):
        for dx in (-1, 0, 1):
            ty0, ty1 = max(0, dy), nh + min(0, dy)
            tx0, tx1 = max(0, dx), nw + min(0, dx)
            s = s.at[:, ty0:ty1, tx0:tx1, :].add(
                pool[:, n, ty0 - dy:ty1 - dy, tx0 - dx:tx1 - dx, :])
            n += 1
    return s[..., :C] / (s[..., C:] + 1e-10)


def compute_final_spixel_labels(assoc, p2sp_index):
    B, _, P = assoc.shape
    H, W = p2sp_index.shape[1], p2sp_index.shape[2]
    p2sp = p2sp_index.reshape(9, P)
    best = jnp.argmax(assoc, axis=1)                                  # (B, P)
    labels = p2sp[best, jnp.arange(P)[None, :]]                       # (B, P)
    return labels.reshape(B, 1, H, W).astype(jnp.int32)


def semar(sf_grid, spix_indices):
    """Hard reconstruction: pixel takes its superpixel's feature.  -> (B, C, H, W)."""
    B, nh, nw, C = sf_grid.shape
    _, _, H, W = spix_indices.shape
    sf_flat = sf_grid.reshape(B, nh * nw, C)
    idx = spix_indices.reshape(B, H * W)
    rec = jnp.take_along_axis(sf_flat, idx[:, :, None], axis=1)       # (B, P, C) gather
    return rec.reshape(B, H, W, C).transpose(0, 3, 1, 2)


# ----------------------------------------------------------------------------
# SuperPixelSamplingNet.forward
# ----------------------------------------------------------------------------

def superpixel_sampling_net_forward(cnn_params, x, args, num_iter=2,
                                    out_dtype='train', ssn=1):
    spixel_h, spixel_w, init_index, cir_index, p2sp_index, invisible, problabel = args
    B, C_in, H, W = x.shape
    x_nhwc = jnp.transpose(x, (0, 2, 3, 1))
    trans_nhwc = cnn_module_forward(cnn_params, x_nhwc) if ssn else x_nhwc

    num_h = int(spixel_h[0])
    num_w = int(spixel_w[0])
    cell_h, cell_w = H // num_h, W // num_w
    P = H * W
    # TODO(synk): assumes init_index / p2sp_index / invisible encode the standard
    # regular SSN grid exactly as constructed in __main__; cir_index is accepted
    # but unused (scatter is done via the grid-structured cell pooling instead).
    inv_flat = invisible.reshape(9, P).astype(jnp.float32)
    f_pc = trans_nhwc.reshape(B, P, -1)
    x_pc = x_nhwc.reshape(B, P, C_in)

    sf = spixel_feature_init(f_pc, num_h, num_w, cell_h, cell_w)
    for _ in range(num_iter):
        assoc = compute_assignments(sf, f_pc, inv_flat, cell_h, cell_w)
        sf = spixel_feature2(f_pc, assoc, inv_flat, num_h, num_w, cell_h, cell_w)
    final_assoc = compute_assignments(sf, f_pc, inv_flat, cell_h, cell_w)

    new_sf = spixel_feature2(x_pc, final_assoc, inv_flat, num_h, num_w, cell_h, cell_w)
    new_spix_indices = compute_final_spixel_labels(final_assoc, p2sp_index)
    recon_feat2 = semar(new_sf, new_spix_indices)

    if out_dtype == 'layer':
        return recon_feat2, new_spix_indices

    pl_pc = jnp.transpose(problabel, (0, 2, 3, 1)).reshape(B, P, -1)
    spixel_label = spixel_feature2(pl_pc, final_assoc, inv_flat,
                                   num_h, num_w, cell_h, cell_w)
    rec_lab_pc = decode_features(final_assoc, spixel_label, cell_h, cell_w)   # (B,P,L)
    recon_label = rec_lab_pc.reshape(B, H, W, -1).transpose(0, 3, 1, 2)
    if out_dtype == 'train':
        return recon_feat2, recon_label
    return recon_feat2, recon_label, new_spix_indices


# ----------------------------------------------------------------------------
# Example run
# ----------------------------------------------------------------------------

if __name__ == "__main__":
    key = jax.random.PRNGKey(0)
    kx, kp, kparam = jax.random.split(key, 3)

    B, C, H, W = 2, 5, 16, 16          # x: 5-channel (e.g. LAB + xy) image
    num_h = num_w = 4                  # 4x4 = 16 superpixels, 4x4-pixel grid cells
    L = 8                              # problabel classes (kept small)

    x = jax.random.normal(kx, (B, C, H, W), jnp.float32)
    problabel = jax.nn.softmax(jax.random.normal(kp, (B, L, H, W), jnp.float32), axis=1)

    # --- superpixel index tables (regular SSN grid; conventions documented above) ---
    cell_h, cell_w = H // num_h, W // num_w
    ys = jnp.arange(H) // cell_h                                   # (H,)
    xs = jnp.arange(W) // cell_w                                   # (W,)
    init_index = (ys[:, None] * num_w + xs[None, :]).astype(jnp.int32)
    init_index = jnp.broadcast_to(init_index, (B, H, W))
    p2sp_list, inv_list = [], []
    for dy in (-1, 0, 1):
        for dx in (-1, 0, 1):
            cy = ys[:, None] + dy
            cx = xs[None, :] + dx
            invalid = (cy < 0) | (cy >= num_h) | (cx < 0) | (cx >= num_w)
            cyc = jnp.clip(cy, 0, num_h - 1)
            cxc = jnp.clip(cx, 0, num_w - 1)
            p2sp_list.append((cyc * num_w + cxc).astype(jnp.int32))
            inv_list.append(invalid.astype(jnp.float32))
    p2sp_index = jnp.stack(p2sp_list)                              # (9, H, W)
    invisible = jnp.stack(inv_list)                                # (9, H, W)
    cir_index = p2sp_index                                         # accepted but unused

    spixel_h = jnp.array([num_h], jnp.int32)
    spixel_w = jnp.array([num_w], jnp.int32)
    args = (spixel_h, spixel_w, init_index, cir_index, p2sp_index, invisible, problabel)

    cnn_params = init_cnn_params(kparam)

    recon_feat2, recon_label = superpixel_sampling_net_forward(
        cnn_params, x, args, num_iter=2, out_dtype='train', ssn=1)
    jax.block_until_ready((recon_feat2, recon_label))
    assert recon_feat2.shape == (B, C, H, W)
    assert recon_label.shape == (B, L, H, W)
    print("KERNEL_OK")
</pallas_src>

<mosaic_0001>
module attributes {stable_mosaic.version = 11 : i64} {
  func.func @_conv3x3_kernel(%arg0: i32, %arg1: memref<1x342x5xbf16, #tpu.memory_space<vmem>>, %arg2: memref<45x64xbf16, #tpu.memory_space<vmem>>, %arg3: memref<1x64xf32, #tpu.memory_space<vmem>>, %arg4: memref<288x1xf32, #tpu.memory_space<vmem>>, %arg5: memref<1x288x64xf32, #tpu.memory_space<vmem>>, %arg6: memref<1x2x64xf32, #tpu.memory_space<vmem>>) attributes {dimension_semantics = [#tpu.dimension_semantics<parallel>], iteration_bounds = array<i64: 2>, scalar_prefetch = 0 : i64, scratch_operands = 0 : i64, tpu.core_type = #tpu.core_type<tc>, window_params = [{transform_indices = @transform_0, window_bounds = array<i64: 1, 342, 5>}, {pipeline_mode = #tpu.pipeline_mode<synchronous>, transform_indices = @transform_1, window_bounds = array<i64: 45, 64>}, {pipeline_mode = #tpu.pipeline_mode<synchronous>, transform_indices = @transform_2, window_bounds = array<i64: 1, 64>}, {pipeline_mode = #tpu.pipeline_mode<synchronous>, transform_indices = @transform_3, window_bounds = array<i64: 288, 1>}, {transform_indices = @transform_4, window_bounds = array<i64: 1, 288, 64>}, {transform_indices = @transform_5, window_bounds = array<i64: 1, 2, 64>}]} {
    %cst = arith.constant 0.000000e+00 : f32
    %0 = vector.broadcast %cst : f32 to vector<288x64xf32>
    %c0 = arith.constant 0 : index
    %c0_0 = arith.constant 0 : index
    %c0_1 = arith.constant 0 : index
    %1 = vector.load %arg1[%c0, %c0_0, %c0_1] : memref<1x342x5xbf16, #tpu.memory_space<vmem>>, vector<1x288x5xbf16>
    %2 = vector.shape_cast %1 : vector<1x288x5xbf16> to vector<288x5xbf16>
    %c0_2 = arith.constant 0 : index
    %c0_3 = arith.constant 0 : index
    %3 = vector.load %arg2[%c0_2, %c0_3] : memref<45x64xbf16, #tpu.memory_space<vmem>>, vector<5x64xbf16>
    %cst_4 = arith.constant dense<0.000000e+00> : vector<288x64xf32>
    %4 = tpu.matmul %2, %3, %cst_4 {dimension_numbers = #tpu.dot_dimension_numbers<[1], [0], [0], [1], [0, 0, 1, 1], [], []>} : vector<288x5xbf16>, vector<5x64xbf16>, vector<288x64xf32> -> vector<288x64xf32>
    %5 = arith.addf %0, %4 : vector<288x64xf32>
    %c0_5 = arith.constant 0 : index
    %c1 = arith.constant 1 : index
    %c0_6 = arith.constant 0 : index
    %6 = vector.load %arg1[%c0_5, %c1, %c0_6] : memref<1x342x5xbf16, #tpu.memory_space<vmem>>, vector<1x288x5xbf16>
    %7 = vector.shape_cast %6 : vector<1x288x5xbf16> to vector<288x5xbf16>
    %c5 = arith.constant 5 : index
    %c0_7 = arith.constant 0 : index
    %8 = vector.load %arg2[%c5, %c0_7] : memref<45x64xbf16, #tpu.memory_space<vmem>>, vector<5x64xbf16>
    %cst_8 = arith.constant dense<0.000000e+00> : vector<288x64xf32>
    %9 = tpu.matmul %7, %8, %cst_8 {dimension_numbers = #tpu.dot_dimension_numbers<[1], [0], [0], [1], [0, 0, 1, 1], [], []>} : vector<288x5xbf16>, vector<5x64xbf16>, vector<288x64xf32> -> vector<288x64xf32>
    %10 = arith.addf %5, %9 : vector<288x64xf32>
    %c0_9 = arith.constant 0 : index
    %c2 = arith.constant 2 : index
    %c0_10 = arith.constant 0 : index
    %11 = vector.load %arg1[%c0_9, %c2, %c0_10] : memref<1x342x5xbf16, #tpu.memory_space<vmem>>, vector<1x288x5xbf16>
    %12 = vector.shape_cast %11 : vector<1x288x5xbf16> to vector<288x5xbf16>
    %c10 = arith.constant 10 : index
    %c0_11 = arith.constant 0 : index
    %13 = vector.load %arg2[%c10, %c0_11] : memref<45x64xbf16, #tpu.memory_space<vmem>>, vector<5x64xbf16>
    %cst_12 = arith.constant dense<0.000000e+00> : vector<288x64xf32>
    %14 = tpu.matmul %12, %13, %cst_12 {dimension_numbers = #tpu.dot_dimension_numbers<[1], [0], [0], [1], [0, 0, 1, 1], [], []>} : vector<288x5xbf16>, vector<5x64xbf16>, vector<288x64xf32> -> vector<288x64xf32>
    %15 = arith.addf %10, %14 : vector<288x64xf32>
    %c0_13 = arith.constant 0 : index
    %c18 = arith.constant 18 : index
    %c0_14 = arith.constant 0 : index
    %16 = vector.load %arg1[%c0_13, %c18, %c0_14] : memref<1x342x5xbf16, #tpu.memory_space<vmem>>, vector<1x288x5xbf16>
    %17 = vector.shape_cast %16 : vector<1x288x5xbf16> to vector<288x5xbf16>
    %c15 = arith.constant 15 : index
    %c0_15 = arith.constant 0 : index
    %18 = vector.load %arg2[%c15, %c0_15] : memref<45x64xbf16, #tpu.memory_space<vmem>>, vector<5x64xbf16>
    %cst_16 = arith.constant dense<0.000000e+00> : vector<288x64xf32>
    %19 = tpu.matmul %17, %18, %cst_16 {dimension_numbers = #tpu.dot_dimension_numbers<[1], [0], [0], [1], [0, 0, 1, 1], [], []>} : vector<288x5xbf16>, vector<5x64xbf16>, vector<288x64xf32> -> vector<288x64xf32>
    %20 = arith.addf %15, %19 : vector<288x64xf32>
    %c0_17 = arith.constant 0 : index
    %c19 = arith.constant 19 : index
    %c0_18 = arith.constant 0 : index
    %21 = vector.load %arg1[%c0_17, %c19, %c0_18] : memref<1x342x5xbf16, #tpu.memory_space<vmem>>, vector<1x288x5xbf16>
    %22 = vector.shape_cast %21 : vector<1x288x5xbf16> to vector<288x5xbf16>
    %c20 = arith.constant 20 : index
    %c0_19 = arith.constant 0 : index
    %23 = vector.load %arg2[%c20, %c0_19] : memref<45x64xbf16, #tpu.memory_space<vmem>>, vector<5x64xbf16>
    %cst_20 = arith.constant dense<0.000000e+00> : vector<288x64xf32>
    %24 = tpu.matmul %22, %23, %cst_20 {dimension_numbers = #tpu.dot_dimension_numbers<[1], [0], [0], [1], [0, 0, 1, 1], [], []>} : vector<288x5xbf16>, vector<5x64xbf16>, vector<288x64xf32> -> vector<288x64xf32>
    %25 = arith.addf %20, %24 : vector<288x64xf32>
    %c0_21 = arith.constant 0 : index
    %c20_22 = arith.constant 20 : index
    %c0_23 = arith.constant 0 : index
    %26 = vector.load %arg1[%c0_21, %c20_22, %c0_23] : memref<1x342x5xbf16, #tpu.memory_space<vmem>>, vector<1x288x5xbf16>
    %27 = vector.shape_cast %26 : vector<1x288x5xbf16> to vector<288x5xbf16>
    %c25 = arith.constant 25 : index
    %c0_24 = arith.constant 0 : index
    %28 = vector.load %arg2[%c25, %c0_24] : memref<45x64xbf16, #tpu.memory_space<vmem>>, vector<5x64xbf16>
    %cst_25 = arith.constant dense<0.000000e+00> : vector<288x64xf32>
    %29 = tpu.matmul %27, %28, %cst_25 {dimension_numbers = #tpu.dot_dimension_numbers<[1], [0], [0], [1], [0, 0, 1, 1], [], []>} : vector<288x5xbf16>, vector<5x64xbf16>, vector<288x64xf32> -> vector<288x64xf32>
    %30 = arith.addf %25, %29 : vector<288x64xf32>
    %c0_26 = arith.constant 0 : index
    %c36 = arith.constant 36 : index
    %c0_27 = arith.constant 0 : index
    %31 = vector.load %arg1[%c0_26, %c36, %c0_27] : memref<1x342x5xbf16, #tpu.memory_space<vmem>>, vector<1x288x5xbf16>
    %32 = vector.shape_cast %31 : vector<1x288x5xbf16> to vector<288x5xbf16>
    %c30 = arith.constant 30 : index
    %c0_28 = arith.constant 0 : index
    %33 = vector.load %arg2[%c30, %c0_28] : memref<45x64xbf16, #tpu.memory_space<vmem>>, vector<5x64xbf16>
    %cst_29 = arith.constant dense<0.000000e+00> : vector<288x64xf32>
    %34 = tpu.matmul %32, %33, %cst_29 {dimension_numbers = #tpu.dot_dimension_numbers<[1], [0], [0], [1], [0, 0, 1, 1], [], []>} : vector<288x5xbf16>, vector<5x64xbf16>, vector<288x64xf32> -> vector<288x64xf32>
    %35 = arith.addf %30, %34 : vector<288x64xf32>
    %c0_30 = arith.constant 0 : index
    %c37 = arith.constant 37 : index
    %c0_31 = arith.constant 0 : index
    %36 = vector.load %arg1[%c0_30, %c37, %c0_31] : memref<1x342x5xbf16, #tpu.memory_space<vmem>>, vector<1x288x5xbf16>
    %37 = vector.shape_cast %36 : vector<1x288x5xbf16> to vector<288x5xbf16>
    %c35 = arith.constant 35 : index
    %c0_32 = arith.constant 0 : index
    %38 = vector.load %arg2[%c35, %c0_32] : memref<45x64xbf16, #tpu.memory_space<vmem>>, vector<5x64xbf16>
    %cst_33 = arith.constant dense<0.000000e+00> : vector<288x64xf32>
    %39 = tpu.matmul %37, %38, %cst_33 {dimension_numbers = #tpu.dot_dimension_numbers<[1], [0], [0], [1], [0, 0, 1, 1], [], []>} : vector<288x5xbf16>, vector<5x64xbf16>, vector<288x64xf32> -> vector<288x64xf32>
    %40 = arith.addf %35, %39 : vector<288x64xf32>
    %c0_34 = arith.constant 0 : index
    %c38 = arith.constant 38 : index
    %c0_35 = arith.constant 0 : index
    %41 = vector.load %arg1[%c0_34, %c38, %c0_35] : memref<1x342x5xbf16, #tpu.memory_space<vmem>>, vector<1x288x5xbf16>
    %42 = vector.shape_cast %41 : vector<1x288x5xbf16> to vector<288x5xbf16>
    %c40 = arith.constant 40 : index
    %c0_36 = arith.constant 0 : index
    %43 = vector.load %arg2[%c40, %c0_36] : memref<45x64xbf16, #tpu.memory_space<vmem>>, vector<5x64xbf16>
    %cst_37 = arith.constant dense<0.000000e+00> : vector<288x64xf32>
    %44 = tpu.matmul %42, %43, %cst_37 {dimension_numbers = #tpu.dot_dimension_numbers<[1], [0], [0], [1], [0, 0, 1, 1], [], []>} : vector<288x5xbf16>, vector<5x64xbf16>, vector<288x64xf32> -> vector<288x64xf32>
    %45 = arith.addf %40, %44 : vector<288x64xf32>
    %c0_38 = arith.constant 0 : index
    %c0_39 = arith.constant 0 : index
    %46 = vector.load %arg3[%c0_38, %c0_39] : memref<1x64xf32, #tpu.memory_space<vmem>>, vector<1x64xf32>
    %47 = vector.broadcast %46 : vector<1x64xf32> to vector<288x64xf32>
    %48 = arith.addf %45, %47 : vector<288x64xf32>
    %c0_40 = arith.constant 0 : index
    %c0_41 = arith.constant 0 : index
    %49 = vector.load %arg4[%c0_40, %c0_41] : memref<288x1xf32, #tpu.memory_space<vmem>>, vector<288x1xf32>
    %50 = vector.broadcast %49 : vector<288x1xf32> to vector<288x64xf32>
    %51 = arith.mulf %48, %50 : vector<288x64xf32>
    %c0_42 = arith.constant 0 : index
    %c0_43 = arith.constant 0 : index
    %c0_44 = arith.constant 0 : index
    %52 = vector.load %arg5[%c0_42, %c0_43, %c0_44] : memref<1x288x64xf32, #tpu.memory_space<vmem>>, vector<1x288x64xf32>
    %53 = vector.shape_cast %52 : vector<1x288x64xf32> to vector<288x64xf32>
    %54 = vector.shape_cast %51 : vector<288x64xf32> to vector<1x288x64xf32>
    tpu.vector_store %arg5[%c0_42, %c0_43, %c0_44], %54 {strides = array<i32>} : memref<1x288x64xf32, #tpu.memory_space<vmem>>, vector<1x288x64xf32>,
    %cst_45 = arith.constant dense<0.000000e+00> : vector<64xf32>
    %55 = vector.multi_reduction <add>, %51, %cst_45 [0] : vector<288x64xf32> to vector<64xf32>
    %56 = vector.shape_cast %55 : vector<64xf32> to vector<1x64xf32>
    %c0_46 = arith.constant 0 : index
    %c0_47 = arith.constant 0 : index
    %c0_48 = arith.constant 0 : index
    %57 = vector.load %arg6[%c0_46, %c0_47, %c0_48] : memref<1x2x64xf32, #tpu.memory_space<vmem>>, vector<1x1x64xf32>
    %58 = vector.shape_cast %57 : vector<1x1x64xf32> to vector<1x64xf32>
    %59 = vector.shape_cast %56 : vector<1x64xf32> to vector<1x1x64xf32>
    tpu.vector_store %arg6[%c0_46, %c0_47, %c0_48], %59 {strides = array<i32>} : memref<1x2x64xf32, #tpu.memory_space<vmem>>, vector<1x1x64xf32>,
    %60 = arith.mulf %51, %51 : vector<288x64xf32>
    %cst_49 = arith.constant dense<0.000000e+00> : vector<64xf32>
    %61 = vector.multi_reduction <add>, %60, %cst_49 [0] : vector<288x64xf32> to vector<64xf32>
    %62 = vector.shape_cast %61 : vector<64xf32> to vector<1x64xf32>
    %c0_50 = arith.constant 0 : index
    %c1_51 = arith.constant 1 : index
    %c0_52 = arith.constant 0 : index
    %63 = vector.load %arg6[%c0_50, %c1_51, %c0_52] : memref<1x2x64xf32, #tpu.memory_space<vmem>>, vector<1x1x64xf32>
    %64 = vector.shape_cast %63 : vector<1x1x64xf32> to vector<1x64xf32>
    %65 = vector.shape_cast %62 : vector<1x64xf32> to vector<1x1x64xf32>
    tpu.vector_store %arg6[%c0_50, %c1_51, %c0_52], %65 {strides = array<i32>} : memref<1x2x64xf32, #tpu.memory_space<vmem>>, vector<1x1x64xf32>,
    return
  }
  func.func @transform_0(%arg0: i32) -> (i32, i32, i32) {
    %c0_i32 = arith.constant 0 : i32
    %c0_i32_0 = arith.constant 0 : i32
    %c0_i32_1 = arith.constant 0 : i32
    return %arg0, %c0_i32, %c0_i32_0 : i32, i32, i32
  }
  func.func @transform_1(%arg0: i32) -> (i32, i32) {
    %c0_i32 = arith.constant 0 : i32
    %c0_i32_0 = arith.constant 0 : i32
    %c0_i32_1 = arith.constant 0 : i32
    return %c0_i32, %c0_i32_0 : i32, i32
  }
  func.func @transform_2(%arg0: i32) -> (i32, i32) {
    %c0_i32 = arith.constant 0 : i32
    %c0_i32_0 = arith.constant 0 : i32
    %c0_i32_1 = arith.constant 0 : i32
    return %c0_i32, %c0_i32_0 : i32, i32
  }
  func.func @transform_3(%arg0: i32) -> (i32, i32) {
    %c0_i32 = arith.constant 0 : i32
    %c0_i32_0 = arith.constant 0 : i32
    %c0_i32_1 = arith.constant 0 : i32
    return %c0_i32, %c0_i32_0 : i32, i32
  }
  func.func @transform_4(%arg0: i32) -> (i32, i32, i32) {
    %c0_i32 = arith.constant 0 : i32
    %c0_i32_0 = arith.constant 0 : i32
    %c0_i32_1 = arith.constant 0 : i32
    return %arg0, %c0_i32, %c0_i32_0 : i32, i32, i32
  }
  func.func @transform_5(%arg0: i32) -> (i32, i32, i32) {
    %c0_i32 = arith.constant 0 : i32
    %c0_i32_0 = arith.constant 0 : i32
    %c0_i32_1 = arith.constant 0 : i32
    return %arg0, %c0_i32, %c0_i32_0 : i32, i32, i32
  }
}

</mosaic_0001>

<bundles_post_ra>
// kernel: tpu_custom_call.1
= control target key start
LH: loop header
LB: loop body
LE: loop exit
PB: predicated region body
PF: predicated region fallthrough
CT: control target
= control target key end

     0   :  { %11 = vsyncpa [#allocation3], 0  ;;  %s7353_s0 = inlined_call_operand.hbm [shape: bf16[2,342,5], index: 0, kind: input, shape index: {}]   ;;  %s7354_s1 = inlined_call_operand.hbm [shape: bf16[45,64], index: 1, kind: input, shape index: {}]   ;;  %s7355_s2 = inlined_call_operand.hbm [shape: f32[1,64], index: 2, kind: input, shape index: {}]   ;;  %s7356_s3 = inlined_call_operand.hbm [shape: f32[288,1], index: 3, kind: input, shape index: {}]   ;;  %s7357_s4 = inlined_call_operand.hbm [shape: f32[2,288,64], index: 4, kind: output, shape index: {0}]   ;;  %s7358_s5 = inlined_call_operand.hbm [shape: f32[2,2,64], index: 5, kind: output, shape index: {1}]  }
   0x1   :  { %13 = vsyncpa [#allocation3 + $0x1], 0 }
   0x2   :  { %14 = vsyncpa [#allocation6], 0 }
   0x3   :  { %15 = vsyncpa [#allocation9], 0 }
   0x4   :  { %16 = vsyncpa [#allocation4], 0 }
   0x5   :  { %18 = vsyncpa [#allocation4 + $0x1], 0 }
   0x6   :  { %19 = vsyncpa [#allocation12], 0 }
   0x7   :  { %21 = vsyncpa [#allocation12 + $0x1], 0  ;;  %s5993_s18 = smov 0   ;;  %s5995_s19 = smov 0  }
   0x8   :  { %s5997_s20 = smov 0   ;;  %s5999_s21 = smov 0  }
   0x9 LB: > { %s6014_s22 = sadd.s32 4294967295, %s5947_s21   ;;  %s4498_s23 = sadd.s32 4294967294, %s5947_s21   ;;  %s5947_s21 = sphi %s5999_s21, %s7383_s21   ;;  %s5943_s20 = sphi %s5997_s20, %s7382_s20   ;;  %s5939_s19 = sphi %s5995_s19, %s7381_s19   ;;  %s5935_s18 = sphi %s5993_s18, %s7380_s18  }
   0xa   : > { %p47_p0 = scmp.ne.s32.totalorder %s5939_s19, %s5935_s18  ;;  %p7359_p1 = scmp.eq.s32.totalorder %s6014_s22, 0 }
   0xb   : > { %p140_p3 = scmp.eq.s32.totalorder %s4498_s23, 1  ;;  %p4499_p5 = scmp.ge.s32.totalorder %s5947_s21, 1 }
   0xc   : > { %p6023_p4 = por %p7359_p1, %p47_p0  ;;  %p173_p7 = scmp.lt.s32.totalorder %s5947_s21, 3 }
   0xd   : > { %p6028_p6 = por %p140_p3, %p47_p0  ;;  %s5949_s27 = smov [#allocation5]  }
   0xe   : > { %s7363_s24 = scalar_select %p6023_p4, 1, 0 }
   0xf   : > { %s7364_s25 = scalar_select %p6028_p6, 1, 0 }
  0x10   : > { %p6033_p8 = pnand %p4499_p5, %p173_p7  ;;  %s185_s28 = sshll.u32 %s5949_s27, 4  ;;  %s6037_s28 = int_to_ptr.vmem [resolvable:$true] %s185_s28 }
  0x11   : > { %s5950_s30 = smov [#allocation7]   ;;  %s5951_s7 = smov [#allocation8]  }
  0x12   : > { %s7365_s26 = scalar_select %p6033_p8, 1, 0 }
  0x13   : > { %p5573_p9 = pneg %p6033_p8  ;;  %s199_s6 = sshll.u32 %s5950_s30, 4  ;;  %s6048_s6 = int_to_ptr.vmem [resolvable:$true] %s199_s6 }
  0x14   : > { %s6050_s8 = sshll.u32 %s5951_s7, 4  ;;  %s5727_s11 = scalar_lea.hbm %s7354_s1, 384  ;;  %s210_s8 = int_to_ptr.vmem [resolvable:$true] %s6050_s8 }
  0x15   : > { %p6044_p11 = pnand %p5573_p9, %p7359_p1  ;;  %p5728_p12 = scmp.ne.s32.totalorder %s7354_s1, %s5727_s11 }
  0x16   : > { %p5734_p5 = scmp.lt.u32.totalorder %s5727_s11, %s7354_s1 }
  0x17   : > { %p6060_p13 = pneg %p6044_p11 }
  0x19   : > { %p5730_p0 = pnand %p6060_p13, %p5728_p12 }
  0x1b   : > { %p5731_p3 = pneg %p5730_p0 }
  0x1d   : > { %p5736_p7 = pnand %p5734_p5, %p5731_p3 }
  0x1f   : > { %5739 = shalt.err (!%p5736_p7)
}
  0x20   : > { %s5740_s17 = scalar_lea.vmem %s6037_s28, 384  ;;  %p5748_p2 = scmp.lt.s32.totalorder %s6037_s28, %s6037_s28 }
  0x21   : > { %p5741_p9 = scmp.ne.s32.totalorder %s6037_s28, %s5740_s17  ;;  %p5749_p6 = scmp.lt.s32.totalorder %s5740_s17, %s5740_s17 }
  0x23   : > { %p5743_p10 = pnand %p5741_p9, %p6060_p13  ;;  %p5750_p12 = por %p5749_p6, %p5748_p2 }
  0x25   : > { %p5744_p1 = pneg %p5743_p10 }
  0x27   : > { %p5751_p0 = pnand %p5750_p12, %p5744_p1 }
  0x29   : > { %5754 = shalt.err (!%p5751_p0)
}
  0x2a   : > { %s7362_s23 = smov 64   ;;  %s5953_s27 = smov 4  }
  0x2b   : > { %5576 = dma.hbm_to_vmem [thread:$0]  (!%p6044_p11), %s7354_s1, 384, %s6037_s28, [#allocation6], %s7362_s23, %s7362_s23, %s5953_s27  }
  0x2c   : > { %s5755_s11 = scalar_lea.hbm %s7355_s2, 16 }
  0x2d   : > { %p5756_p1 = scmp.ne.s32.totalorder %s7355_s2, %s5755_s11  ;;  %p5762_p10 = scmp.lt.u32.totalorder %s5755_s11, %s7355_s2 }
  0x2f   : > { %p5758_p2 = pnand %p5756_p1, %p6060_p13 }
  0x31   : > { %p5759_p6 = pneg %p5758_p2 }
  0x33   : > { %p5764_p3 = pnand %p5762_p10, %p5759_p6 }
  0x35   : > { %5767 = shalt.err (!%p5764_p3)
}
  0x36   : > { %s5768_s28 = scalar_lea.vmem %s6048_s6, 16  ;;  %s5775_s17 = scalar_lea.vmem %s6048_s6, 32 }
  0x37   : > { %p5769_p5 = scmp.ne.s32.totalorder %s6048_s6, %s5768_s28  ;;  %p5776_p12 = scmp.lt.s32.totalorder %s6048_s6, %s6048_s6 }
  0x38   : > { %p5777_p0 = scmp.lt.s32.totalorder %s5775_s17, %s5768_s28 }
  0x39   : > { %p5771_p7 = pnand %p5769_p5, %p6060_p13 }
  0x3a   : > { %p5778_p1 = por %p5777_p0, %p5776_p12 }
  0x3b   : > { %p5772_p9 = pneg %p5771_p7 }
  0x3d   : > { %p5779_p2 = pnand %p5778_p1, %p5772_p9 }
  0x3f   : > { %5782 = shalt.err (!%p5779_p2)
}
  0x40   : > { %5579 = dma.hbm_to_vmem [thread:$0]  (!%p6044_p11), %s7355_s2, 16, %s6048_s6, [#allocation6]  }
  0x41   : > { %s5783_s11 = scalar_lea.hbm %s7356_s3, 4608 }
  0x42   : > { %p5784_p6 = scmp.ne.s32.totalorder %s7356_s3, %s5783_s11  ;;  %p5790_p5 = scmp.lt.u32.totalorder %s5783_s11, %s7356_s3 }
  0x44   : > { %p5786_p10 = pnand %p5784_p6, %p6060_p13 }
  0x46   : > { %p5787_p3 = pneg %p5786_p10 }
  0x48   : > { %p5792_p7 = pnand %p5790_p5, %p5787_p3 }
  0x4a   : > { %5795 = shalt.err (!%p5792_p7)
}
  0x4b   : > { %s5796_s28 = scalar_lea.vmem %s210_s8, 4608  ;;  %p5804_p1 = scmp.lt.s32.totalorder %s210_s8, %s210_s8 }
  0x4c   : > { %p5797_p9 = scmp.ne.s32.totalorder %s210_s8, %s5796_s28  ;;  %p5805_p2 = scmp.lt.s32.totalorder %s5796_s28, %s5796_s28 }
  0x4e   : > { %p5799_p12 = pnand %p5797_p9, %p6060_p13  ;;  %p5806_p4 = por %p5805_p2, %p5804_p1 }
  0x50   : > { %p5800_p0 = pneg %p5799_p12 }
  0x52   : > { %p5807_p8 = pnand %p5806_p4, %p5800_p0 }
  0x54   : > { %5810 = shalt.err (!%p5807_p8)
}
  0x55   : > { %s5954_s6 = smov 128   ;;  %s5955_s14 = smov 8  }
  0x56   : > { %5582 = dma.hbm_to_vmem [thread:$0]  (!%p6044_p11), %s7356_s3, 4608, %s210_s8, [#allocation9], %s5954_s6, %s5954_s6, %s5955_s14  }
  0x57   : > { %s6128_s7 = sadd.s32 1, %s5947_s21   ;;  %s34_s10 = sadd.s32 1, %s5943_s20 }
  0x58   : > { %s31_s9 = ssub.s32 %s5947_s21, %s6128_s7  ;;  %p41_p8 = scmp.ne.s32.totalorder %s5943_s20, %s5939_s19 }
  0x59   : > { %p32_p4 = scmp.eq.s32.totalorder %s31_s9, 0  ;;  %p42_p13 = scmp.eq.s32.totalorder %s5947_s21, 0 }
  0x5a   : > { %p5597_p6 = scmp.lt.s32.totalorder %s5947_s21, 2  ;;  %p7368_p3 = scmp.eq.s32.totalorder %s6014_s22, 1 }
  0x5b   : > { %s6138_s11 = scalar_select %p32_p4, %s5943_s20, %s34_s10  }
  0x5c   : > { %p43_p10 = por %p42_p13, %p41_p8  ;;  %p6142_p5 = por %p7368_p3, %p41_p8 }
  0x5d   : > { %s223_s29 = sand.u32 1, %s5943_s20   ;;  %s5551_s13 = smul.u32 2752, %s5947_s21 }
  0x5e   : > { %s5550_s8 = smul.u32 172, %s223_s29  ;;  %p6148_p11 = pnand %p5597_p6, %p43_p10 }
  0x5f   : > { %s6155_s6 = scalar_lea.hbm %s7353_s0, %s5551_s13  ;;  %s6159_s30 = scalar_lea.sflag [#allocation3], %s223_s29 }
  0x60   : > { %s227_s14 = scalar_lea.vmem [#allocation2], %s5550_s8  ;;  %s5811_s9 = scalar_lea.hbm %s6155_s6, 2752 }
  0x61   : > { %s234_s17 = sshll.u32 %s227_s14, 4  ;;  %p5812_p7 = scmp.ne.s32.totalorder %s6155_s6, %s5811_s9  ;;  %s6157_s17 = int_to_ptr.vmem [resolvable:$true] %s234_s17 }
  0x62   : > { %p5813_p9 = pneg %p6148_p11  ;;  %s5816_s16 = scalar_lea.hbm %s7353_s0, 5504 }
  0x63   : > { %p5817_p1 = scmp.lt.u32.totalorder %s6155_s6, %s7353_s0  ;;  %p5818_p2 = scmp.lt.u32.totalorder %s5816_s16, %s5811_s9 }
  0x64   : > { %p5814_p12 = pnand %p5813_p9, %p5812_p7  ;;  %p5820_p8 = scmp.lt.u32.totalorder %s5811_s9, %s6155_s6 }
  0x65   : > { %p5819_p4 = por %p5818_p2, %p5817_p1 }
  0x66   : > { %p5815_p0 = pneg %p5814_p12 }
  0x67   : > { %p5821_p13 = por %p5820_p8, %p5819_p4 }
  0x69   : > { %p5822_p6 = pnand %p5821_p13, %p5815_p0 }
  0x6b   : > { %5825 = shalt.err (!%p5822_p6)
}
  0x6c   : > { %s5826_s29 = scalar_lea.vmem %s6157_s17, 2752  ;;  %s5956_s8 = smov [#allocation2]  }
  0x6d   : > { %p5827_p10 = scmp.ne.s32.totalorder %s6157_s17, %s5826_s29  ;;  %s5831_s14 = sshll.u32 %s5956_s8, 4  ;;  %s5832_s14 = int_to_ptr.vmem [resolvable:$false] %s5831_s14 }
  0x6e   : > { %s5833_s23 = scalar_lea.vmem %s5832_s14, 5504  ;;  %p5834_p12 = scmp.lt.s32.totalorder %s6157_s17, %s5832_s14 }
  0x6f   : > { %p5829_p3 = pnand %p5827_p10, %p5813_p9  ;;  %p5835_p1 = scmp.lt.s32.totalorder %s5833_s23, %s5826_s29 }
  0x71   : > { %p5830_p7 = pneg %p5829_p3  ;;  %p5836_p2 = por %p5835_p1, %p5834_p12 }
  0x73   : > { %p5837_p4 = pnand %p5836_p2, %p5830_p7 }
  0x75   : > { %5840 = shalt.err (!%p5837_p4)
}
  0x76   : > { %s7371_s9 = smov 64   ;;  %p7372_p9 = scmp.ne.s32.totalorder %s7365_s26, 0 }
  0x77   : > { %5586 = dma.hbm_to_vmem [thread:$0]  (!%p6148_p11), %s6155_s6, 2752, %s6157_s17, %s6159_s30, %s7371_s9, %s7371_s9, %s5953_s27  }
  0x78   : > { %246 = sbr.rel (%p7372_p9) target bundleno = 738 (0x2e2), region = 36  ;;  %s6193_s10 = sand.u32 (!%p7372_p9), 1, %s5939_s19  }
  0x79   : > { %s5552_s13 = smul.u32 (!%p7372_p9), 172, %s6193_s10  ;;  %s249_s16 = scalar_lea.sflag (!%p7372_p9), [#allocation3], %s6193_s10 }
  0x7a   : > { %p7373_p0 = scmp.ne.s32.totalorder (!%p7372_p9), %s7363_s24, 0 }
  0x7b   : > { %s6197_s28 = scalar_lea.vmem (!%p7372_p9), [#allocation2], %s5552_s13 }
  0x7f   : > { %5914 = dma.done.wait (%p7373_p0), %s249_s16, 2752  }
  0x80   : > { %5916 = vsyncadd (%p7373_p0), %s249_s16, 4294964544  ;;  %p7374_p11 = scmp.eq.s32.totalorder %s6014_s22, 0 }
  0x82   : > { %5918 = dma.done.wait (%p7374_p11), [#allocation6], 400   ;;  %p7375_p8 = pmov %p7374_p11 }
  0x84   : > { %5920 = vsyncadd (%p7375_p8), [#allocation6], 4294966896  ;;  %p7376_p13 = pmov %p7375_p8 }
  0x85   : > { %p7377_p6 = pmov %p7375_p8 }
  0x86   : > { %5922 = dma.done.wait (%p7376_p13), [#allocation9], 4608  }
  0x87   : > { %5924 = vsyncadd (%p7377_p6), [#allocation9], 4294962688  ;;  %vm647_vm0 = vcmask 1041408   ;;  %vm648_vm1 = vcmask 1042432   ;;  %v5957_v0 = vmov 65535   ;;  %vm592_vm3 = vcmask 39936  }
  0x88   : > { %v649_v1 = vsel %vm647_vm0, 4294967295, %v5957_v0  ;;  %v5647_v3 = vld [vmem:[#allocation5 + $0x8] sm:$0x1c]   ;;  %vm1822_vm2 = vsmask.f32 6400  ;;  %v6234_v18 = vld [vmem:[%s6197_s28 + $0x8] sm:$0xff]  }
  0x89   : > { %v6211_v2 = vsel %vm648_vm1, %v649_v1, 0  ;;  %v1364_v4 = vld [vmem:[%s6197_s28 + $0x8] sm:$0xe]  ;;  %v6215_v5 = vld [vmem:[%s6197_s28 + $0xc] sm:$0xf]  ;;  %v1998_v6 = vrot.slane %v5647_v3, 2 }
  0x8a   : > { %v6218_v7 = vcombine.low %v1364_v4, %v6215_v5  ;;  %v6221_v8 = vld [vmem:[%s6197_s28 + $0x10] sm:$0xff]   ;;  %v6230_v14 = vld [vmem:[%s6197_s28 + $0x18] sm:$0xff]   ;;  %vm430_vm4 = vsmask.f32 7424  ;;  %v297_v23 = vld [vmem:[%s6197_s28] sm:$0xf] }
  0x8b   : > { %v5650_v9 = vld [vmem:[#allocation5] sm:$0x1c]   ;;  %v6224_v10 = vand.u32 %v1998_v6, %v6211_v2  ;;  %v1832_v13 = vshrl.u32 %v6221_v8, 16  ;;  %v1835_v15 = vshll.u32 %v6221_v8, 16  ;;  %v1841_v22 = vshrl.u32 %v6230_v14, 16  ;;  %v6258_v49 = vld [vmem:[%s6197_s28 + $0x20] sm:$0xff]  }
  0x8c   : > { %v1824_v11 = vshrl.u32 %v6218_v7, 16  ;;  %v1827_v12 = vshll.u32 %v6218_v7, 16  ;;  %v585_v16 = vshrl.u32 %v5650_v9, 16  ;;  %v588_v17 = vshll.u32 %v5650_v9, 16  ;;  %v6242_v28 = vld [vmem:[%s6197_s28 + $0x4] sm:$0xf] }
  0x8d   : > { %5070 = vmatprep.subr.bf16.mxu0 %v6224_v10  ;;  %v1834_v21 = vrot.slane %v1832_v13, 1  ;;  %v1837_v24 = vrot.slane %v1835_v15, 2  ;;  %v1844_v27 = vshll.u32 %v6230_v14, 16  ;;  %v1843_v30 = vrot.slane %v1841_v22, 1  ;;  %v6253_v45 = vld [vmem:[%s6197_s28 + $0x10] sm:$0xff]   ;;  %v6264_v54 = vld [vmem:[%s6197_s28 + $0x28] sm:$0xff]  }
  0x8e   : > { %v1826_v19 = vrot.slane %v1824_v11, 1  ;;  %v1829_v20 = vrot.slane %v1827_v12, 2  ;;  %5071 = vmatpush3.bf16.msra.mxu0 %v6224_v10  ;;  %v587_v25 = vrot.slane %v585_v16, 2  ;;  %v590_v26 = vrot.slane %v588_v17, 3  ;;  %v333_v50 = vld [vmem:[#allocation5] sm:$0x7] }
  0x8f   : > { %v5652_v31 = vld [vmem:[#allocation5 + $0xc] ss:$0 sps:$4 sm:$0x77]   ;;  %v6245_v32 = vcombine.low %v297_v23, %v6242_v28  ;;  %v1838_v33 = vor.u32 %v1837_v24, %v1834_v21  ;;  %v1846_v35 = vrot.slane %v1844_v27, 2  ;;  %v439_v36 = vshll.u32 %v6234_v18, 16  ;;  %v6281_v9 = vld [vmem:[%s6197_s28 + $0x30] sm:$0xff]  }
  0x90   : > { %v1830_v29 = vor.u32 %v1829_v20, %v1826_v19  ;;  %v591_v34 = vor.u32 %v590_v26, %v587_v25  ;;  %v2316_v37 = vshrl.u32 %v5652_v31, 16  ;;  %v2318_v38 = vshll.u32 %v5652_v31, 16  ;;  %v6269_v59 = vld [vmem:[%s6197_s28 + $0x18] sm:$0xff]   ;;  %v6278_v6 = vld [vmem:[%s6197_s28 + $0x20] sm:$0xff]   ;;  %v6293_v22 = vld [vmem:[%s6197_s28 + $0x28] sm:$0xff]   ;;  %s5553_s24 = smul.u32 288, %s6193_s10 }
  0x91   : > { %v432_v39 = vshrl.u32 %v6245_v32, 16  ;;  %v434_v40 = vshll.u32 %v6245_v32, 16  ;;  %v1847_v43 = vor.u32 %v1846_v35, %v1843_v30  ;;  %v441_v44 = vrot.slane %v439_v36, 1  ;;  %v6286_v16 = vld [vmem:[%s6197_s28 + $0x38] sm:$0xff]   ;;  %s5554_s27 = smul.u32 4608, %s6014_s22  ;;  %s4333_s29 = scalar_lea.sflag [#allocation4], %s6193_s10 }
  0x92   : > { %v1839_v41 = vsel %vm1822_vm2, %v1830_v29, %v1838_v33  ;;  %v652_v42 = vand.u32 %v6211_v2, %v591_v34  ;;  %v2320_v46 = vrot.slane %v2318_v38, 1  ;;  %v443_v48 = vshrl.u32 %v6234_v18, 16  ;;  %s7021_s26 = scalar_lea.vmem [#allocation10], %s5553_s24  ;;  %s5959_s14 = smov [#allocation10]  }
  0x93   : > { %5072 = vmatprep.mubr.msk.bf16.mxu0 %vm592_vm3, %v1839_v41  ;;  %v436_v47 = vrot.slane %v434_v40, 1  ;;  %v1848_v51 = vsel %vm1822_vm2, %v1838_v33, %v1847_v43  ;;  %v447_v52 = vshll.u32 %v6253_v45, 16  ;;  %v868_v53 = vand.u32 %v6211_v2, %v333_v50  ;;  %v6304_v41 = vld [vmem:[%s6197_s28 + $0x30] sm:$0xff]   ;;  %s4351_s15 = sshll.u32 %s7021_s26, 4  ;;  %s7261_s30 = scalar_lea.hbm %s7357_s4, %s5554_s27  ;;  %s7267_s15 = int_to_ptr.vmem [resolvable:$true] %s4351_s15 }
  0x94   : > { %4918 = vmatprep.subr.bf16.mxu1 %v652_v42  ;;  %5073 = vmatmul.mubr.msk.bf16.vlgmr.msra.gmra.mrb[0].mxu0 %vm592_vm3, %v1848_v51  ;;  %v2321_v55 = vor.u32 %v2320_v46, %v2316_v37  ;;  %v445_v57 = vor.u32 %v443_v48, %v441_v44  ;;  %v1850_v58 = vshrl.u32 %v6258_v49, 16  ;;  %v1853_v61 = vshll.u32 %v6258_v49, 16  ;;  %v6315_v48 = vld [vmem:[%s6197_s28 + $0x48] sm:$0xff]   ;;  %s5841_s8 = scalar_lea.vmem %s7267_s15, 4608  ;;  %s5845_s23 = sshll.u32 %s5959_s14, 4  ;;  %s5846_s23 = int_to_ptr.vmem [resolvable:$false] %s5845_s23 }
  0x95   : > { %4919 = vmatpush3.bf16.msra.mxu1 %v652_v42  ;;  %v437_v56 = vor.u32 %v436_v47, %v432_v39  ;;  %v449_v60 = vrot.slane %v447_v52, 1  ;;  %v1859_v62 = vshrl.u32 %v6264_v54, 16  ;;  %v1862_v63 = vshll.u32 %v6264_v54, 16  ;;  %v6307_v42 = vld [vmem:[%s6197_s28 + $0x40] sm:$0xff]   ;;  %p5842_p10 = scmp.ne.s32.totalorder %s7267_s15, %s5841_s8  ;;  %s5847_s9 = scalar_lea.vmem %s5846_s23, 9216 }
  0x96   : > { %4956 = vmatprep.subr.bf16.mxu1 %v868_v53  ;;  %v2377_v0 = vand.u32 %v2321_v55, %v6211_v2  ;;  %v1852_v3 = vrot.slane %v1850_v58, 1  ;;  %v451_v4 = vshrl.u32 %v6253_v45, 16  ;;  %v1855_v12 = vrot.slane %v1853_v61, 2  ;;  %p5848_p12 = scmp.lt.s32.totalorder %s7267_s15, %s5846_s23  ;;  %p5849_p1 = scmp.lt.s32.totalorder %s5847_s9, %s5841_s8 }
  0x97   : > { %v442_v1 = vsel %vm430_vm4, %v437_v56, %v441_v44  ;;  %v450_v11 = vsel %vm430_vm4, %v445_v57, %v449_v60  ;;  %v1861_v13 = vrot.slane %v1859_v62, 1  ;;  %v1864_v15 = vrot.slane %v1862_v63, 2  ;;  %p5843_p3 = pnand %p5842_p10, %p6142_p5 }
  0x98   : > { %4920 = vmatprep.mubr.msk.bf16.mxu1 %vm592_vm3, %v442_v1  ;;  %5108 = vmatprep.subr.bf16.mxu0 %v2377_v0  ;;  %v453_v17 = vor.u32 %v451_v4, %v449_v60  ;;  %v455_v19 = vshll.u32 %v6269_v59, 16  ;;  %v459_v20 = vshrl.u32 %v6269_v59, 16  ;;  %v463_v21 = vshll.u32 %v6278_v6, 16  ;;  %p5850_p2 = por %p5849_p1, %p5848_p12 }
  0x99   : > { %4921 = vmatmul.mubr.msk.bf16.vlgmr.msra.gmra.mrb[0].mxu1 %vm592_vm3, %v450_v11  ;;  %5109 = vmatpush3.bf16.msra.mxu0 %v2377_v0  ;;  %v1856_v23 = vor.u32 %v1855_v12, %v1852_v3  ;;  %v1865_v24 = vor.u32 %v1864_v15, %v1861_v13  ;;  %v1868_v25 = vshrl.u32 %v6281_v9, 16  ;;  %v1871_v26 = vshll.u32 %v6281_v9, 16  ;;  %v6327_v0 = vld [vmem:[%s6197_s28 + $0x38] sm:$0xff]   ;;  %p5844_p7 = pneg %p5843_p3 }
  0x9a   : > { %4957 = vmatpush3.bf16.msra.mxu1 %v868_v53  ;;  %v457_v27 = vrot.slane %v455_v19, 1  ;;  %v465_v29 = vrot.slane %v463_v21, 1  ;;  %v1877_v30 = vshrl.u32 %v6286_v16, 16  ;;  %v1880_v31 = vshll.u32 %v6286_v16, 16 }
  0x9b   : > { %v1857_v33 = vsel %vm1822_vm2, %v1847_v43, %v1856_v23  ;;  %v1866_v34 = vsel %vm1822_vm2, %v1856_v23, %v1865_v24  ;;  %v1870_v35 = vrot.slane %v1868_v25, 1  ;;  %v1873_v36 = vrot.slane %v1871_v26, 2  ;;  %p5851_p4 = pnand %p5850_p2, %p5844_p7 }
  0x9c   : > { %5076 = vmatprep.mubr.msk.bf16.mxu0 %vm592_vm3, %v1857_v33  ;;  %v458_v37 = vsel %vm430_vm4, %v453_v17, %v457_v27  ;;  %v461_v38 = vor.u32 %v459_v20, %v457_v27  ;;  %v1879_v39 = vrot.slane %v1877_v30, 1  ;;  %v1882_v40 = vrot.slane %v1880_v31, 2  ;;  %v6335_v17 = vld [vmem:[%s6197_s28 + $0x40] sm:$0xff]   ;;  %v6339_v20 = vld [vmem:[%s6197_s28 + $0x50] sm:$0xff]   ;;  %v6347_v30 = vld [vmem:[%s6197_s28 + $0x48] sm:$0xff]  }
  0x9d   : > { %5077 = vmatmul.mubr.msk.bf16.gmra.mrb[4].mxu0 %vm592_vm3, %v1866_v34  ;;  %4924 = vmatprep.mubr.msk.bf16.mxu1 %vm592_vm3, %v458_v37  ;;  %v1874_v43 = vor.u32 %v1873_v36, %v1870_v35  ;;  %v467_v44 = vshrl.u32 %v6278_v6, 16  ;;  %v471_v46 = vshll.u32 %v6293_v22, 16  ;;  %v475_v47 = vshrl.u32 %v6293_v22, 16 }
  0x9e   : > { %v466_v50 = vsel %vm430_vm4, %v461_v38, %v465_v29  ;;  %v1883_v51 = vor.u32 %v1882_v40, %v1879_v39  ;;  %v479_v52 = vshll.u32 %v6304_v41, 16  ;;  %v1886_v53 = vshrl.u32 %v6307_v42, 16 }
  0x9f   : > { %v1875_v55 = vsel %vm1822_vm2, %v1865_v24, %v1874_v43  ;;  %v469_v56 = vor.u32 %v467_v44, %v465_v29  ;;  %v473_v57 = vrot.slane %v471_v46, 1  ;;  %v1889_v58 = vshll.u32 %v6307_v42, 16  ;;  %v6342_v24 = vld [vmem:[%s6197_s28 + $0x58] sm:$0xff]  }
  0xa0   : > { %5080 = vmatprep.mubr.msk.bf16.mxu0 %vm592_vm3, %v1875_v55  ;;  %v1884_v60 = vsel %vm1822_vm2, %v1874_v43, %v1883_v51  ;;  %v481_v61 = vrot.slane %v479_v52, 1  ;;  %v1888_v62 = vrot.slane %v1886_v53, 1  ;;  %v1895_v63 = vshrl.u32 %v6315_v48, 16 }
  0xa1   : > { %4925 = vmatmul.mubr.msk.bf16.gmra.mrb[4].mxu1 %vm592_vm3, %v466_v50  ;;  %v474_v1 = vsel %vm430_vm4, %v469_v56, %v473_v57  ;;  %v477_v3 = vor.u32 %v475_v47, %v473_v57  ;;  %v1891_v4 = vrot.slane %v1889_v58, 2  ;;  %v1898_v11 = vshll.u32 %v6315_v48, 16  ;;  %v6361_v47 = vld [vmem:[%s6197_s28 + $0x50] sm:$0xff]   ;;  %v2269_v50 = vld [vmem:[%s6197_s28 + $0x8] sm:$0xc] }
  0xa2   : > { %4928 = vmatprep.mubr.msk.bf16.mxu1 %vm592_vm3, %v474_v1  ;;  %v1897_v12 = vrot.slane %v1895_v63, 1  ;;  %v483_v13 = vshrl.u32 %v6304_v41, 16  ;;  %v487_v15 = vshll.u32 %v6327_v0, 16  ;;  %v491_v19 = vshrl.u32 %v6327_v0, 16 }
  0xa3   : > { %v1892_v21 = vor.u32 %v1891_v4, %v1888_v62  ;;  %v1900_v23 = vrot.slane %v1898_v11, 2  ;;  %v495_v27 = vshll.u32 %v6335_v17, 16  ;;  %v1904_v29 = vshrl.u32 %v6339_v20, 16 }
  0xa4   : > { %v485_v25 = vor.u32 %v483_v13, %v481_v61  ;;  %v489_v26 = vrot.slane %v487_v15, 1  ;;  %v482_v31 = vsel %vm430_vm4, %v477_v3, %v481_v61  ;;  %v1907_v34 = vshll.u32 %v6339_v20, 16  ;;  %v6367_v61 = vld [vmem:[%s6197_s28 + $0x58] sm:$0xff]  }
  0xa5   : > { %5081 = vmatmul.mubr.msk.bf16.gmra.mrb[8].mxu0 %vm592_vm3, %v1884_v60  ;;  %v1893_v33 = vsel %vm1822_vm2, %v1883_v51, %v1892_v21  ;;  %v1913_v35 = vshrl.u32 %v6342_v24, 16  ;;  %v1901_v36 = vor.u32 %v1900_v23, %v1897_v12  ;;  %v1906_v38 = vrot.slane %v1904_v29, 1  ;;  %v5673_v60 = vld [vmem:[#allocation5 + $0xc] sm:$0x38]  }
  0xa6   : > { %5084 = vmatprep.mubr.msk.bf16.mxu0 %vm592_vm3, %v1893_v33  ;;  %v490_v37 = vsel %vm430_vm4, %v485_v25, %v489_v26  ;;  %v1909_v39 = vrot.slane %v1907_v34, 2  ;;  %v1916_v40 = vshll.u32 %v6342_v24, 16  ;;  %v497_v43 = vrot.slane %v495_v27, 1  ;;  %v6391_v34 = vld [vmem:[%s6197_s28 + $0x68] sm:$0xff]  }
  0xa7   : > { %v499_v44 = vshrl.u32 %v6335_v17, 16  ;;  %v503_v46 = vshll.u32 %v6347_v30, 16  ;;  %v493_v51 = vor.u32 %v491_v19, %v489_v26  ;;  %v1915_v53 = vrot.slane %v1913_v35, 1  ;;  %v6385_v26 = vld [vmem:[%s6197_s28 + $0x60] sm:$0xff]  }
  0xa8   : > { %v1910_v52 = vor.u32 %v1909_v39, %v1906_v38  ;;  %v1918_v55 = vrot.slane %v1916_v40, 2  ;;  %v1902_v56 = vsel %vm1822_vm2, %v1892_v21, %v1901_v36  ;;  %v4644_v63 = vcombine.low %v2269_v50, %v6215_v5 }
  0xa9   : > { %4929 = vmatmul.mubr.msk.bf16.gmra.mrb[8].mxu1 %vm592_vm3, %v482_v31  ;;  %v501_v57 = vor.u32 %v499_v44, %v497_v43  ;;  %v505_v58 = vrot.slane %v503_v46, 1  ;;  %v511_v1 = vshll.u32 %v6361_v47, 16  ;;  %v2766_v3 = vrot.slane %v5673_v60, 3  ;;  %v5683_v46 = vld [vmem:[#allocation5 + $0x4] ss:$0 sps:$4 sm:$0xee]  }
  0xaa   : > { %4932 = vmatprep.mubr.msk.bf16.mxu1 %vm592_vm3, %v490_v37  ;;  %v1911_v62 = vsel %vm1822_vm2, %v1901_v36, %v1910_v52  ;;  %v498_v4 = vsel %vm430_vm4, %v493_v51, %v497_v43  ;;  %v6374_v11 = vor.u32 %v1918_v55, %v1915_v53  ;;  %v507_v12 = vshrl.u32 %v6347_v30, 16  ;;  %v6406_v51 = vld [vmem:[%s6197_s28 + $0x70] sm:$0xff]  }
  0xab   : > { %v506_v13 = vsel %vm430_vm4, %v501_v57, %v505_v58  ;;  %v2822_v15 = vand.u32 %v2766_v3, %v6211_v2  ;;  %v515_v5 = vshrl.u32 %v6361_v47, 16  ;;  %v519_v19 = vshll.u32 %v6367_v61, 16 }
  0xac   : > { %v2275_v21 = vrot.slane %v4644_v63, 2  ;;  %v2276_v23 = vrot.slane %v6221_v8, 2  ;;  %v513_v25 = vrot.slane %v511_v1, 1  ;;  %vm2274_vm5 = vcmask 1045504  }
  0xad   : > { %5085 = vmatmul.mubr.msk.bf16.gmra.mrb[12].mxu0 %vm592_vm3, %v1902_v56  ;;  %5146 = vmatprep.subr.bf16.mxu0 %v2822_v15  ;;  %v509_v27 = vor.u32 %v507_v12, %v505_v58  ;;  %v1920_v29 = vsel %vm1822_vm2, %v1910_v52, %v6374_v11  ;;  %v521_v33 = vrot.slane %v519_v19, 1  ;;  %v527_v35 = vshll.u32 %v6385_v26, 16  ;;  %v6411_v56 = vld [vmem:[%s6197_s28 + $0x78] sm:$0xff]  }
  0xae   : > { %5088 = vmatprep.mubr.msk.bf16.mxu0 %vm592_vm3, %v1911_v62  ;;  %v517_v31 = vor.u32 %v515_v5, %v513_v25  ;;  %v2277_v8 = vsel %vm2274_vm5, %v2275_v21, %v2276_v23  ;;  %v2278_v37 = vrot.slane %v6230_v14, 2  ;;  %v523_v38 = vshrl.u32 %v6367_v61, 16 }
  0xaf   : > { %v514_v36 = vsel %vm430_vm4, %v509_v27, %v513_v25  ;;  %v531_v40 = vshrl.u32 %v6385_v26, 16  ;;  %v535_v43 = vshll.u32 %v6391_v34, 16  ;;  %v2280_v44 = vrot.slane %v6258_v49, 2  ;;  %v6435_v25 = vld [vmem:[%s6197_s28 + $0x88] sm:$0xff]  }
  0xb0   : > { %v522_v39 = vsel %vm430_vm4, %v517_v31, %v521_v33  ;;  %v529_v50 = vrot.slane %v527_v35, 1  ;;  %v525_v14 = vor.u32 %v523_v38, %v521_v33  ;;  %v2279_v52 = vsel %vm2274_vm5, %v2276_v23, %v2278_v37 }
  0xb1   : > { %4933 = vmatmul.mubr.msk.bf16.gmra.mrb[12].mxu1 %vm592_vm3, %v498_v4  ;;  %v537_v55 = vrot.slane %v535_v43, 1  ;;  %v1093_v57 = vrot.slane %v5683_v46, 1  ;;  %v2281_v58 = vsel %vm2274_vm5, %v2278_v37, %v2280_v44  ;;  %v543_v49 = vshll.u32 %v6406_v51, 16 }
  0xb2   : > { %4936 = vmatprep.mubr.msk.bf16.mxu1 %vm592_vm3, %v506_v13  ;;  %v533_v53 = vor.u32 %v531_v40, %v529_v50  ;;  %v530_v62 = vsel %vm430_vm4, %v525_v14, %v529_v50  ;;  %v2282_v63 = vrot.slane %v6264_v54, 2  ;;  %v539_v1 = vshrl.u32 %v6391_v34, 16  ;;  %v6430_v54 = vld [vmem:[%s6197_s28 + $0x80] sm:$0xff]   ;;  %v6449_v40 = vld [vmem:[%s6197_s28 + $0x90] ss:$0 sps:$4 sm:$0x11]  }
  0xb3   : > { %v6416_v60 = vand.u32 %v1093_v57, %v6211_v2  ;;  %v547_v4 = vshrl.u32 %v6406_v51, 16  ;;  %v551_v12 = vshll.u32 %v6411_v56, 16  ;;  %v2284_v13 = vrot.slane %v6281_v9, 2 }
  0xb4   : > { %v538_v3 = vsel %vm430_vm4, %v533_v53, %v537_v55  ;;  %v545_v5 = vrot.slane %v543_v49, 1  ;;  %v2283_v19 = vsel %vm2274_vm5, %v2280_v44, %v2282_v63  ;;  %v2286_v9 = vrot.slane %v6286_v16, 2 }
  0xb5   : > { %5089 = vmatmul.mubr.msk.bf16.gmra.mrb[16].mxu0 %vm592_vm3, %v1920_v29  ;;  %4994 = vmatprep.subr.bf16.mxu1 %v6416_v60  ;;  %v553_v23 = vrot.slane %v551_v12, 1  ;;  %v2285_v27 = vsel %vm2274_vm5, %v2282_v63, %v2284_v13  ;;  %v5694_v29 = vld [vmem:[#allocation5 + $0x10] ss:$0 sps:$4 sm:$0xee]   ;;  %v555_v31 = vshrl.u32 %v6411_v56, 16  ;;  %v559_v33 = vshll.u32 %v6430_v54, 16 }
  0xb6   : > { %5110 = vmatprep.mubr.msk.bf16.mxu0 %vm592_vm3, %v2277_v8  ;;  %v549_v21 = vor.u32 %v547_v4, %v545_v5  ;;  %v3217_v35 = vshrl.u32 %v5694_v29, 16  ;;  %v563_v38 = vshrl.u32 %v6430_v54, 16  ;;  %v2288_v16 = vrot.slane %v6307_v42, 2  ;;  %v5705_v4 = vld [vmem:[#allocation5 + $0x4] sm:$0x38]  }
  0xb7   : > { %v561_v46 = vrot.slane %v559_v33, 1  ;;  %v557_v50 = vor.u32 %v555_v31, %v553_v23  ;;  %v571_v49 = vshrl.u32 %v6435_v25, 16  ;;  %v2290_v63 = vrot.slane %v6315_v48, 2  ;;  %v6472_v48 = vld [vmem:[%s6197_s28 + $0x60] sm:$0xff]   ;;  %v6484_v33 = vld [vmem:[%s6197_s28 + $0x68] sm:$0xff]  }
  0xb8   : > { %v554_v37 = vsel %vm430_vm4, %v549_v21, %v553_v23  ;;  %v3219_v43 = vrot.slane %v3217_v35, 1  ;;  %v2289_v57 = vsel %vm2274_vm5, %v2286_v9, %v2288_v16  ;;  %v2294_v23 = vrot.slane %v6342_v24, 2 }
  0xb9   : > { %4937 = vmatmul.mubr.msk.bf16.gmra.mrb[16].mxu1 %vm592_vm3, %v514_v36  ;;  %v3220_v36 = vshll.u32 %v5694_v29, 16  ;;  %v565_v53 = vor.u32 %v563_v38, %v561_v46  ;;  %v562_v42 = vsel %vm430_vm4, %v557_v50, %v561_v46  ;;  %v2296_v29 = vrot.slane %v6472_v48, 2  ;;  %v6521_v50 = vld [vmem:[%s6197_s28 + $0x88] sm:$0xff]  }
  0xba   : > { %4940 = vmatprep.mubr.msk.bf16.mxu1 %vm592_vm3, %v522_v39  ;;  %v567_v39 = vshll.u32 %v6435_v25, 16  ;;  %v2298_v24 = vrot.slane %v6484_v33, 2  ;;  %vm1052_vm6 = vcmask 1046528   ;;  %vm3042_vm7 = vsmask.f32 5376 }
  0xbb   : > { %v3222_v44 = vrot.slane %v3220_v36, 2  ;;  %v2297_v35 = vsel %vm2274_vm5, %v2294_v23, %v2296_v29  ;;  %v6488_v36 = vld [vmem:[%s6197_s28 + $0x70] sm:$0xff]   ;;  %vm3499_vm8 = vcmask 1044480   ;;  %vm4102_vm9 = vcmask 523264  }
  0xbc   : > { %v2299_v38 = vsel %vm2274_vm5, %v2296_v29, %v2298_v24  ;;  %v6577_v29 = vld [vmem:[%s6197_s28 + $0x30] sm:$0xff]  }
  0xbd   : > { %5111 = vmatmul.mubr.msk.bf16.vlgmr.msra.gmra.mrb[0].mxu0 %vm592_vm3, %v2279_v52  ;;  %v3223_v14 = vor.u32 %v3222_v44, %v3219_v43  ;;  %v2287_v52 = vsel %vm2274_vm5, %v2284_v13, %v2286_v9  ;;  %v6509_v43 = vld [vmem:[%s6197_s28 + $0x80] sm:$0xff]  }
  0xbe   : > { %5147 = vmatpush3.bf16.msra.mxu0 %v2822_v15  ;;  %5114 = vmatprep.mubr.msk.bf16.mxu0 %vm592_vm3, %v2281_v58  ;;  %v541_v15 = vor.u32 %v539_v1, %v537_v55  ;;  %v569_v55 = vrot.slane %v567_v39, 1  ;;  %v6504_v39 = vld [vmem:[%s6197_s28 + $0x78] sm:$0xff]   ;;  %v2304_v44 = vrot.slane %v6509_v43, 2 }
  0xbf   : > { %v6456_v58 = vand.u32 %v3223_v14, %v6211_v2 }
  0xc0   : > { %v546_v8 = vsel %vm430_vm4, %v541_v15, %v545_v5  ;;  %v570_v1 = vsel %vm430_vm4, %v565_v53, %v569_v55  ;;  %v573_v12 = vor.u32 %v571_v49, %v569_v55  ;;  %v2291_v5 = vsel %vm2274_vm5, %v2288_v16, %v2290_v63 }
  0xc1   : > { %4941 = vmatmul.mubr.msk.bf16.gmra.mrb[20].mxu1 %vm592_vm3, %v530_v62  ;;  %v575_v62 = vshll.u32 %v6449_v40, 16  ;;  %5184 = vmatprep.subr.bf16.mxu0 %v6456_v58  ;;  %v1539_v15 = vshrl.u32 %v5705_v4, 16  ;;  %v2306_v53 = vrot.slane %v6521_v50, 2 }
  0xc2   : > { %4944 = vmatprep.mubr.msk.bf16.mxu1 %vm592_vm3, %v538_v3  ;;  %v2292_v3 = vrot.slane %v6339_v20, 2 }
  0xc3   : > { %v577_v13 = vrot.slane %v575_v62, 1  ;;  %v2307_v49 = vsel %vm2274_vm5, %v2304_v44, %v2306_v53  ;;  %v6541_v62 = vld [vmem:[%s6197_s28 + $0x98] ss:$0 sps:$4 sm:$0x33]  }
  0xc4   : > { %v2293_v21 = vsel %vm2274_vm5, %v2290_v63, %v2292_v3  ;;  %v2295_v31 = vsel %vm2274_vm5, %v2292_v3, %v2294_v23  ;;  %v6548_v3 = vld [vmem:[%s6197_s28 + $0x18] sm:$0xff]  }
  0xc5   : > { %5115 = vmatmul.mubr.msk.bf16.gmra.mrb[4].mxu0 %vm592_vm3, %v2283_v19  ;;  %v1542_v19 = vshll.u32 %v5705_v4, 16  ;;  %v578_v20 = vsel %vm430_vm4, %v573_v12, %v577_v13  ;;  %v2310_v4 = vrot.slane %v6541_v62, 2  ;;  %v2725_v13 = vrot.slane %v6548_v3, 2 }
  0xc6   : > { %5118 = vmatprep.mubr.msk.bf16.mxu0 %vm592_vm3, %v2285_v27  ;;  %v1541_v27 = vrot.slane %v1539_v15, 3  ;;  %v6561_v15 = vld [vmem:[%s6197_s28 + $0x20] sm:$0xff]  }
  0xc7   : > { %v1544_v9 = vrot.slane %v1542_v19, 4 }
  0xc9   : > { %4945 = vmatmul.mubr.msk.bf16.gmra.mrb[24].mxu1 %vm592_vm3, %v546_v8  ;;  %v1545_v8 = vor.u32 %v1544_v9, %v1541_v27  ;;  %v3495_v27 = vld [vmem:[#allocation5 + $0x14] sm:$0x7] }
  0xca   : > { %4948 = vmatprep.mubr.msk.bf16.mxu1 %vm592_vm3, %v554_v37 }
  0xcb   : > { %v6494_v37 = vand.u32 %v1545_v8, %v6211_v2  ;;  %v6581_v8 = vld [vmem:[%s6197_s28 + $0x38] sm:$0xff]  }
  0xcd   : > { %5119 = vmatmul.mubr.msk.bf16.gmra.mrb[8].mxu0 %vm592_vm3, %v2287_v52  ;;  %v6525_v52 = vld [vmem:[%s6197_s28 + $0x90] sm:$0xff]  }
  0xce   : > { %5122 = vmatprep.mubr.msk.bf16.mxu0 %vm592_vm3, %v2289_v57  ;;  %v2308_v55 = vrot.slane %v6525_v52, 2  ;;  %v2592_v57 = vld [vmem:[%s6197_s28 + $0x10] sm:$0xc] }
  0xd0   : > { %v2309_v63 = vsel %vm2274_vm5, %v2306_v53, %v2308_v55 }
  0xd1   : > { %4949 = vmatmul.mubr.msk.bf16.gmra.mrb[28].mxu1 %vm592_vm3, %v562_v42  ;;  %v6535_v42 = vld [vmem:[%s6197_s28 + $0x14] sm:$0xf] }
  0xd2   : > { %4952 = vmatprep.mubr.msk.bf16.mxu1 %vm592_vm3, %v570_v1  ;;  %v6545_v1 = vcombine.low %v2592_v57, %v6535_v42  ;;  %v1047_v57 = vld [vmem:[%s6197_s28] sm:$0xe] }
  0xd4   : > { %v2724_v12 = vrot.slane %v6545_v1, 2 }
  0xd5   : > { %5123 = vmatmul.mubr.msk.bf16.gmra.mrb[12].mxu0 %vm592_vm3, %v2291_v5  ;;  %v2311_v5 = vsel %vm2274_vm5, %v2308_v55, %v2310_v4  ;;  %v6618_v55 = vld [vmem:[%s6197_s28 + $0x58] sm:$0xff]  }
  0xd6   : > { %5126 = vmatprep.mubr.msk.bf16.mxu0 %vm592_vm3, %v2293_v21  ;;  %v2726_v19 = vsel %vm2274_vm5, %v2724_v12, %v2725_v13  ;;  %v6565_v21 = vld [vmem:[%s6197_s28 + $0x28] sm:$0xff]   ;;  %v2741_v4 = vrot.slane %v6618_v55, 2 }
  0xd7   : > { %v2729_v23 = vrot.slane %v6565_v21, 2 }
  0xd9   : > { %4953 = vmatmul.mubr.msk.bf16.gmra.mrb[32].mxu1 %vm592_vm3, %v578_v20  ;;  %v2727_v20 = vrot.slane %v6561_v15, 2 }
  0xda   : > { %4958 = vmatprep.mubr.msk.bf16.mxu1 %vm592_vm3, %v6245_v32  ;;  %v2300_v32 = vrot.slane %v6488_v36, 2 }
  0xdb   : > { %v2728_v9 = vsel %vm2274_vm5, %v2725_v13, %v2727_v20  ;;  %v6632_v13 = vld [vmem:[%s6197_s28 + $0x60] sm:$0xff]  }
  0xdc   : > { %v2301_v16 = vsel %vm2274_vm5, %v2298_v24, %v2300_v32  ;;  %v2731_v24 = vrot.slane %v6577_v29, 2 }
  0xdd   : > { %5127 = vmatmul.mubr.msk.bf16.gmra.mrb[16].mxu0 %vm592_vm3, %v2295_v31  ;;  %v2730_v31 = vsel %vm2274_vm5, %v2727_v20, %v2729_v23 }
  0xde   : > { %5130 = vmatprep.mubr.msk.bf16.mxu0 %vm592_vm3, %v2297_v35  ;;  %v6584_v35 = vand.u32 %v3495_v27, %v6211_v2  ;;  %v2732_v2 = vsel %vm2274_vm5, %v2729_v23, %v2731_v24  ;;  %v2743_v23 = vrot.slane %v6632_v13, 2 }
  0xe1   : > { %4959 = vmatmul.mubr.msk.bf16.vlgmr.msra.gmra.mrb[0].mxu1 %vm592_vm3, %v6234_v18 }
  0xe2   : > { %4995 = vmatpush3.bf16.msra.mxu1 %v6416_v60  ;;  %4962 = vmatprep.mubr.msk.bf16.mxu1 %vm592_vm3, %v6253_v45  ;;  %v2302_v60 = vrot.slane %v6504_v39, 2 }
  0xe3   : > { %5032 = vmatprep.subr.bf16.mxu1 %v6494_v37 }
  0xe4   : > { %v2303_v46 = vsel %vm2274_vm5, %v2300_v32, %v2302_v60  ;;  %v2305_v14 = vsel %vm2274_vm5, %v2302_v60, %v2304_v44  ;;  %v2733_v32 = vrot.slane %v6581_v8, 2 }
  0xe5   : > { %5131 = vmatmul.mubr.msk.bf16.gmra.mrb[20].mxu0 %vm592_vm3, %v2299_v38 }
  0xe6   : > { %5134 = vmatprep.mubr.msk.bf16.mxu0 %vm592_vm3, %v2301_v16  ;;  %v2734_v38 = vsel %vm2274_vm5, %v2731_v24, %v2733_v32  ;;  %v6602_v16 = vld [vmem:[%s6197_s28 + $0x48] sm:$0xff]   ;;  %v6650_v24 = vld [vmem:[%s6197_s28 + $0x70] sm:$0xff]  }
  0xe7   : > { %v2737_v44 = vrot.slane %v6602_v16, 2 }
  0xe9   : > { %4963 = vmatmul.mubr.msk.bf16.gmra.mrb[4].mxu1 %vm592_vm3, %v6269_v59 }
  0xea   : > { %4966 = vmatprep.mubr.msk.bf16.mxu1 %vm592_vm3, %v6278_v6 }
  0xed   : > { %5135 = vmatmul.mubr.msk.bf16.gmra.mrb[24].mxu0 %vm592_vm3, %v2303_v46 }
  0xee   : > { %5138 = vmatprep.mubr.msk.bf16.mxu0 %vm592_vm3, %v2305_v14  ;;  %v6614_v14 = vld [vmem:[%s6197_s28 + $0x50] sm:$0xff]  }
  0xf1   : > { %4967 = vmatmul.mubr.msk.bf16.gmra.mrb[8].mxu1 %vm592_vm3, %v6293_v22 }
  0xf2   : > { %4970 = vmatprep.mubr.msk.bf16.mxu1 %vm592_vm3, %v6304_v41 }
  0xf5   : > { %5139 = vmatmul.mubr.msk.bf16.gmra.mrb[28].mxu0 %vm592_vm3, %v2307_v49  ;;  %v2739_v49 = vrot.slane %v6614_v14, 2 }
  0xf6   : > { %5142 = vmatprep.mubr.msk.bf16.mxu0 %vm592_vm3, %v2309_v63  ;;  %v4566_v63 = vcombine.low %v1047_v57, %v6242_v28  ;;  %v6637_v28 = vld [vmem:[%s6197_s28 + $0x68] sm:$0xff]  }
  0xf7   : > { %v2740_v12 = vsel %vm2274_vm5, %v2737_v44, %v2739_v49  ;;  %v2742_v20 = vsel %vm2274_vm5, %v2739_v49, %v2741_v4  ;;  %v3852_v57 = vld [vmem:[#allocation8 + $0x10] sm:$0xff]  ;;  %v3851_v49 = vld [vmem:[#allocation8 + $0x8] sm:$0xff] }
  0xf9   : > { %4971 = vmatmul.mubr.msk.bf16.gmra.mrb[12].mxu1 %vm592_vm3, %v6327_v0 }
  0xfa   : > { %4974 = vmatprep.mubr.msk.bf16.mxu1 %vm592_vm3, %v6335_v17 }
  0xfd   : > { %5143 = vmatmul.mubr.msk.bf16.gmra.mrb[32].mxu0 %vm592_vm3, %v2311_v5  ;;  %v1053_v5 = vrot.slane %v4566_v63, 1  ;;  %v1060_v63 = vrot.slane %v6278_v6, 1  ;;  %v3853_v6 = vld [vmem:[#allocation8 + $0x18] sm:$0xff] }
  0xfe   : > { %5148 = vmatprep.mubr.msk.bf16.mxu0 %vm592_vm3, %v2726_v19  ;;  %v1054_v19 = vrot.slane %v6234_v18, 1  ;;  %v1056_v18 = vrot.slane %v6253_v45, 1  ;;  %v2747_v45 = vrot.slane %v6650_v24, 2 }
 0x100   : > { %v1055_v27 = vsel %vm1052_vm6, %v1053_v5, %v1054_v19  ;;  %v1062_v5 = vrot.slane %v6293_v22, 1 }
 0x101   : > { %4975 = vmatmul.mubr.msk.bf16.gmra.mrb[16].mxu1 %vm592_vm3, %v6347_v30 }
 0x102   : > { %4978 = vmatprep.mubr.msk.bf16.mxu1 %vm592_vm3, %v6361_v47 }
 0x105   : > { %5149 = vmatmul.mubr.msk.bf16.vlgmr.msra.gmra.mrb[0].mxu0 %vm592_vm3, %v2728_v9  ;;  %v2745_v9 = vrot.slane %v6637_v28, 2 }
 0x106   : > { %5185 = vmatpush3.bf16.msra.mxu0 %v6456_v58  ;;  %5152 = vmatprep.mubr.msk.bf16.mxu0 %vm592_vm3, %v2730_v31  ;;  %v6598_v58 = vld [vmem:[%s6197_s28 + $0x40] sm:$0xff]   ;;  %v2744_v31 = vsel %vm2274_vm5, %v2741_v4, %v2743_v23 }
 0x107   : > { %5222 = vmatprep.subr.bf16.mxu0 %v6584_v35  ;;  %v2735_v60 = vrot.slane %v6598_v58, 2  ;;  %v2748_v4 = vsel %vm2274_vm5, %v2745_v9, %v2747_v45 }
 0x109   : > { %4979 = vmatmul.mubr.msk.bf16.gmra.mrb[20].mxu1 %vm592_vm3, %v6367_v61  ;;  %v2736_v46 = vsel %vm2274_vm5, %v2733_v32, %v2735_v60  ;;  %v2738_v53 = vsel %vm2274_vm5, %v2735_v60, %v2737_v44  ;;  %v1058_v32 = vrot.slane %v6269_v59, 1  ;;  %v1057_v60 = vsel %vm1052_vm6, %v1054_v19, %v1056_v18  ;;  %v3850_v44 = vld [vmem:[#allocation8] sm:$0xff] }
 0x10a   : > { %4982 = vmatprep.mubr.msk.bf16.mxu1 %vm592_vm3, %v6385_v26 }
 0x10d   : > { %5153 = vmatmul.mubr.msk.bf16.gmra.mrb[4].mxu0 %vm592_vm3, %v2732_v2  ;;  %v2746_v2 = vsel %vm2274_vm5, %v2743_v23, %v2745_v9  ;;  %v3854_v23 = vld [vmem:[#allocation8 + $0x20] sm:$0xff] }
 0x10e   : > { %5156 = vmatprep.mubr.msk.bf16.mxu0 %vm592_vm3, %v2734_v38  ;;  %v6655_v38 = vld [vmem:[%s6197_s28 + $0x78] sm:$0xff]  }
 0x10f   : > { %v2749_v59 = vrot.slane %v6655_v38, 2 }
 0x111   : > { %4983 = vmatmul.mubr.msk.bf16.gmra.mrb[24].mxu1 %vm592_vm3, %v6391_v34  ;;  %v2750_v19 = vsel %vm2274_vm5, %v2747_v45, %v2749_v59  ;;  %v6692_v45 = vld [vmem:[%s6197_s28 + $0x98] sm:$0xff]  }
 0x112   : > { %4986 = vmatprep.mubr.msk.bf16.mxu1 %vm592_vm3, %v6406_v51 }
 0x115   : > { %5157 = vmatmul.mubr.msk.bf16.gmra.mrb[8].mxu0 %vm592_vm3, %v2736_v46  ;;  %v1059_v46 = vsel %vm1052_vm6, %v1056_v18, %v1058_v32  ;;  %v3855_v18 = vld [vmem:[#allocation8 + $0x28] sm:$0xff] }
 0x116   : > { %5160 = vmatprep.mubr.msk.bf16.mxu0 %vm592_vm3, %v2738_v53  ;;  %v5958_v53 = vmov 0  }
 0x117   : > { %5645 = vset.pattern.permute.xlu0 %v5958_v53  ;;  %5646 = vset.pattern.permute.xlu1 %v5958_v53 }
 0x118   : > { %3888 = vperm.xlu0 %5645, %v3850_v44   ;;  %3898 = vperm.xlu1 %5646, %v3852_v57   ;;  %v1066_v44 = vrot.slane %v6327_v0, 1  ;;  %v3857_v57 = vld [vmem:[#allocation8 + $0x38] sm:$0xff]  ;;  %v2757_v0 = vrot.slane %v6692_v45, 2 }
 0x119   : > { %4987 = vmatmul.mubr.msk.bf16.gmra.mrb[28].mxu1 %vm592_vm3, %v6411_v56 }
 0x11a   : > { %4990 = vmatprep.mubr.msk.bf16.mxu1 %vm592_vm3, %v6430_v54 }
 0x11c   : > { %3893 = vperm.xlu0 %5645, %v3851_v49   ;;  %3903 = vperm.xlu1 %5646, %v3853_v6   ;;  %v3858_v49 = vld [vmem:[#allocation8 + $0x40] sm:$0xff]  ;;  %v3860_v6 = vld [vmem:[#allocation8 + $0x50] sm:$0xff] }
 0x11d   : > { %5161 = vmatmul.mubr.msk.bf16.gmra.mrb[12].mxu0 %vm592_vm3, %v2740_v12  ;;  %v6669_v12 = vld [vmem:[%s6197_s28 + $0x80] sm:$0xff]  }
 0x11e   : > { %5164 = vmatprep.mubr.msk.bf16.mxu0 %vm592_vm3, %v2742_v20  ;;  %v6675_v20 = vld [vmem:[%s6197_s28 + $0x88] sm:$0xff]   ;;  %v2751_v22 = vrot.slane %v6669_v12, 2 }
 0x11f   : > { %v2753_v9 = vrot.slane %v6675_v20, 2 }
 0x120   : > { %3908 = vperm.xlu0 %5645, %v3854_v23   ;;  %3913 = vperm.xlu1 %5646, %v3855_v18   ;;  %v1068_v23 = vrot.slane %v6335_v17, 1  ;;  %v5712_v18 = vld [vmem:[%s6197_s28 + $0xa0] ss:$0 sps:$4 sm:$0x33]  }
 0x121   : > { %4991 = vmatmul.mubr.msk.bf16.gmra.mrb[32].mxu1 %vm592_vm3, %v6435_v25  ;;  %v2759_v17 = vrot.slane %v5712_v18, 2 }
 0x122   : > { %4996 = vmatprep.mubr.msk.bf16.mxu1 %vm592_vm3, %v1055_v27  ;;  %v1063_v27 = vsel %vm1052_vm6, %v1060_v63, %v1062_v5 }
 0x124   : > { %3923 = vperm.xlu1 %5646, %v3857_v57   ;;  %v3861_v57 = vld [vmem:[#allocation8 + $0x58] sm:$0xff] }
 0x125   : > { %5165 = vmatmul.mubr.msk.bf16.gmra.mrb[16].mxu0 %vm592_vm3, %v2744_v31  ;;  %v3856_v31 = vld [vmem:[#allocation8 + $0x30] sm:$0xff] }
 0x126   : > { %5168 = vmatprep.mubr.msk.bf16.mxu0 %vm592_vm3, %v2746_v2  ;;  %v2752_v2 = vsel %vm2274_vm5, %v2749_v59, %v2751_v22  ;;  %3918 = vperm.xlu0 %5645, %v3856_v31  }
 0x129   : > { %4997 = vmatmul.mubr.msk.bf16.vlgmr.msra.gmra.mrb[0].mxu1 %vm592_vm3, %v1057_v60  ;;  %v6688_v60 = vld [vmem:[%s6197_s28 + $0x90] sm:$0xff]  }
 0x12a   : > { %5033 = vmatpush3.bf16.msra.mxu1 %v6494_v37  ;;  %5000 = vmatprep.mubr.msk.bf16.mxu1 %vm592_vm3, %v1059_v46  ;;  %v1061_v37 = vsel %vm1052_vm6, %v1058_v32, %v1060_v63  ;;  %v1064_v32 = vrot.slane %v6304_v41, 1  ;;  %v2754_v46 = vsel %vm2274_vm5, %v2751_v22, %v2753_v9  ;;  %v2755_v41 = vrot.slane %v6688_v60, 2 }
 0x12b   : > { %5260 = vmatprep.subr.bf16.mxu1 %v6224_v10  ;;  %v3044_v63 = vshrl.u32 %v6545_v1, 16  ;;  %3928 = vperm.xlu0 %5645, %v3858_v49   ;;  %v3862_v49 = vld [vmem:[#allocation8 + $0x60] sm:$0xff] }
 0x12c   : > { %v1065_v53 = vsel %vm1052_vm6, %v1062_v5, %v1064_v32  ;;  %v1067_v59 = vsel %vm1052_vm6, %v1064_v32, %v1066_v44  ;;  %v3055_v5 = vshll.u32 %v6548_v3, 16  ;;  %v2756_v22 = vsel %vm2274_vm5, %v2753_v9, %v2755_v41 }
 0x12d   : > { %5169 = vmatmul.mubr.msk.bf16.gmra.mrb[20].mxu0 %vm592_vm3, %v2748_v4  ;;  %v3047_v4 = vshll.u32 %v6545_v1, 16  ;;  %v1070_v1 = vrot.slane %v6347_v30, 1  ;;  %v3046_v31 = vrot.slane %v3044_v63, 2  ;;  %v3064_v30 = vshll.u32 %v6561_v15, 16 }
 0x12e   : > { %5172 = vmatprep.mubr.msk.bf16.mxu0 %vm592_vm3, %v2750_v19  ;;  %v3052_v19 = vshrl.u32 %v6548_v3, 16 }
 0x12f   : > { %v3049_v32 = vrot.slane %v3047_v4, 3  ;;  %3938 = vperm.xlu0 %5645, %v3860_v6   ;;  %v1071_v9 = vsel %vm1052_vm6, %v1068_v23, %v1070_v1  ;;  %v3070_v4 = vshrl.u32 %v6565_v21, 16  ;;  %v2760_v6 = vsel %vm2274_vm5, %v2757_v0, %v2759_v17 }
 0x130   : > { %v3088_v17 = vshrl.u32 %v6581_v8, 16 }
 0x131   : > { %5001 = vmatmul.mubr.msk.bf16.gmra.mrb[4].mxu1 %vm592_vm3, %v1061_v37  ;;  %v3859_v37 = vld [vmem:[#allocation8 + $0x48] sm:$0xff] }
 0x132   : > { %5004 = vmatprep.mubr.msk.bf16.mxu1 %vm592_vm3, %v1063_v27  ;;  %v2758_v27 = vsel %vm2274_vm5, %v2755_v41, %v2757_v0  ;;  %3933 = vperm.xlu1 %5646, %v3859_v37   ;;  %v3061_v41 = vshrl.u32 %v6561_v15, 16  ;;  %v1072_v37 = vrot.slane %v6361_v47, 1 }
 0x133   : > { %3948 = vperm.xlu0 %5645, %v3862_v49  }
 0x135   : > { %5173 = vmatmul.mubr.msk.bf16.gmra.mrb[24].mxu0 %vm592_vm3, %v2752_v2  ;;  %v3054_v2 = vrot.slane %v3052_v19, 2  ;;  %v3073_v19 = vshll.u32 %v6565_v21, 16 }
 0x136   : > { %5176 = vmatprep.mubr.msk.bf16.mxu0 %vm592_vm3, %v2754_v46  ;;  %v3057_v46 = vrot.slane %v3055_v5, 3  ;;  %3943 = vperm.xlu1 %5646, %v3861_v57   ;;  %v3864_v5 = vld [vmem:[#allocation8 + $0x70] sm:$0xff]  ;;  %v3079_v57 = vshrl.u32 %v6577_v29, 16 }
 0x137   : > { %3958 = vperm.xlu0 %5645, %v3864_v5  }
 0x138   : > { %v3058_v63 = vor.u32 %v3057_v46, %v3054_v2  ;;  %v1073_v2 = vsel %vm1052_vm6, %v1070_v1, %v1072_v37  ;;  %v3865_v46 = vld [vmem:[#allocation8 + $0x78] sm:$0xff]  ;;  %v3867_v1 = vld [vmem:[#allocation8 + $0x88] sm:$0xff] }
 0x139   : > { %5005 = vmatmul.mubr.msk.bf16.gmra.mrb[8].mxu1 %vm592_vm3, %v1065_v53  ;;  %v1069_v53 = vsel %vm1052_vm6, %v1066_v44, %v1068_v23  ;;  %v3863_v44 = vld [vmem:[#allocation8 + $0x68] sm:$0xff]  ;;  %v3063_v23 = vrot.slane %v3061_v41, 2  ;;  %v3868_v41 = vld [vmem:[#allocation8 + $0x90] sm:$0xff] }
 0x13a   : > { %5008 = vmatprep.mubr.msk.bf16.mxu1 %vm592_vm3, %v1067_v59  ;;  %v3050_v59 = vor.u32 %v3049_v32, %v3046_v31  ;;  %3953 = vperm.xlu1 %5646, %v3863_v44   ;;  %v3072_v31 = vrot.slane %v3070_v4, 2  ;;  %v3075_v32 = vrot.slane %v3073_v19, 3  ;;  %v3081_v4 = vrot.slane %v3079_v57, 2 }
 0x13b   : > { %v1078_v44 = vrot.slane %v6391_v34, 1  ;;  %v3097_v34 = vshrl.u32 %v6598_v58, 16 }
 0x13c   : > { %v3059_v18 = vsel %vm3042_vm7, %v3050_v59, %v3058_v63  ;;  %v3076_v49 = vor.u32 %v3075_v32, %v3072_v31  ;;  %v3100_v31 = vshll.u32 %v6598_v58, 16 }
 0x13d   : > { %5177 = vmatmul.mubr.msk.bf16.gmra.mrb[28].mxu0 %vm592_vm3, %v2756_v22  ;;  %v3066_v22 = vrot.slane %v3064_v30, 3  ;;  %v1076_v30 = vrot.slane %v6385_v26, 1 }
 0x13e   : > { %5180 = vmatprep.mubr.msk.bf16.mxu0 %vm592_vm3, %v2758_v27  ;;  %v1074_v27 = vrot.slane %v6367_v61, 1  ;;  %v3082_v61 = vshll.u32 %v6577_v29, 16  ;;  %3963 = vperm.xlu1 %5646, %v3865_v46   ;;  %v3109_v46 = vshll.u32 %v6602_v16, 16  ;;  %v3102_v57 = vrot.slane %v3100_v31, 3 }
 0x13f   : > { %v3067_v47 = vor.u32 %v3066_v22, %v3063_v23  ;;  %v3869_v22 = vld [vmem:[#allocation8 + $0x98] sm:$0xff] }
 0x140   : > { %v1075_v0 = vsel %vm1052_vm6, %v1072_v37, %v1074_v27  ;;  %v3084_v19 = vrot.slane %v3082_v61, 3  ;;  %v3090_v37 = vrot.slane %v3088_v17, 2  ;;  %v1077_v23 = vsel %vm1052_vm6, %v1074_v27, %v1076_v30  ;;  %v3871_v27 = vld [vmem:[#allocation8 + $0xa8] sm:$0xff] }
 0x141   : > { %5009 = vmatmul.mubr.msk.bf16.gmra.mrb[12].mxu1 %vm592_vm3, %v1069_v53  ;;  %v3866_v53 = vld [vmem:[#allocation8 + $0x80] sm:$0xff]  ;;  %v3068_v59 = vsel %vm3042_vm7, %v3058_v63, %v3067_v47  ;;  %v3077_v5 = vsel %vm3042_vm7, %v3067_v47, %v3076_v49  ;;  %v1079_v63 = vsel %vm1052_vm6, %v1076_v30, %v1078_v44  ;;  %v1082_v61 = vrot.slane %v6411_v56, 1  ;;  %v3873_v30 = vld [vmem:[#allocation8 + $0xb8] sm:$0xff] }
 0x142   : > { %5012 = vmatprep.mubr.msk.bf16.mxu1 %vm592_vm3, %v1071_v9  ;;  %v3091_v9 = vshll.u32 %v6581_v8, 16  ;;  %3968 = vperm.xlu0 %5645, %v3866_v53   ;;  %v3085_v26 = vor.u32 %v3084_v19, %v3081_v4  ;;  %v1080_v53 = vrot.slane %v6406_v51, 1  ;;  %v3115_v4 = vshrl.u32 %v6614_v14, 16 }
 0x143   : > { %3973 = vperm.xlu1 %5646, %v3867_v1   ;;  %v3111_v1 = vrot.slane %v3109_v46, 3  ;;  %v3118_v56 = vshll.u32 %v6614_v14, 16  ;;  %v3877_v46 = vld [vmem:[#allocation8 + $0xd8] sm:$0xff] }
 0x144   : > { %v3086_v47 = vsel %vm3042_vm7, %v3076_v49, %v3085_v26  ;;  %v1083_v49 = vsel %vm1052_vm6, %v1080_v53, %v1082_v61 }
 0x145   : > { %5181 = vmatmul.mubr.msk.bf16.gmra.mrb[32].mxu0 %vm592_vm3, %v2760_v6  ;;  %v3093_v6 = vrot.slane %v3091_v9, 3 }
 0x146   : > { %5186 = vmatprep.mubr.msk.bf16.mxu0 %vm592_vm3, %v3059_v18  ;;  %3978 = vperm.xlu0 %5645, %v3868_v41   ;;  %v3870_v18 = vld [vmem:[#allocation8 + $0xa0] sm:$0xff]  ;;  %v1081_v41 = vsel %vm1052_vm6, %v1078_v44, %v1080_v53  ;;  %v3875_v44 = vld [vmem:[#allocation8 + $0xc8] sm:$0xff] }
 0x147   : > { %v3094_v32 = vor.u32 %v3093_v6, %v3090_v37  ;;  %3983 = vperm.xlu1 %5646, %v3869_v22   ;;  %v3127_v37 = vshll.u32 %v6618_v55, 16  ;;  %v3876_v6 = vld [vmem:[#allocation8 + $0xd0] sm:$0xff] }
 0x149   : > { %5013 = vmatmul.mubr.msk.bf16.gmra.mrb[16].mxu1 %vm592_vm3, %v1073_v2  ;;  %v3106_v2 = vshrl.u32 %v6602_v16, 16  ;;  %v3095_v17 = vsel %vm3042_vm7, %v3085_v26, %v3094_v32  ;;  %v3120_v26 = vrot.slane %v3118_v56, 3 }
 0x14a   : > { %5016 = vmatprep.mubr.msk.bf16.mxu1 %vm592_vm3, %v1075_v0  ;;  %3988 = vperm.xlu0 %5645, %v3870_v18   ;;  %v3099_v0 = vrot.slane %v3097_v34, 2  ;;  %v3117_v18 = vrot.slane %v3115_v4, 2 }
 0x14b   : > { %v3108_v9 = vrot.slane %v3106_v2, 2  ;;  %3993 = vperm.xlu1 %5646, %v3871_v27   ;;  %v3129_v2 = vrot.slane %v3127_v37, 3  ;;  %v3878_v27 = vld [vmem:[#allocation8 + $0xe0] sm:$0xff]  ;;  %v3881_v37 = vld [vmem:[#allocation8 + $0xf8] sm:$0xff] }
 0x14c   : > { %v3103_v51 = vor.u32 %v3102_v57, %v3099_v0  ;;  %v3142_v0 = vshrl.u32 %v6637_v28, 16  ;;  %v3145_v57 = vshll.u32 %v6637_v28, 16 }
 0x14d   : > { %5187 = vmatmul.mubr.msk.bf16.vlgmr.msra.gmra.mrb[0].mxu0 %vm592_vm3, %v3068_v59  ;;  %v3874_v59 = vld [vmem:[#allocation8 + $0xc0] sm:$0xff]  ;;  %v3112_v19 = vor.u32 %v3111_v1, %v3108_v9  ;;  %v1088_v9 = vrot.slane %v6449_v40, 1 }
 0x14e   : > { %5223 = vmatpush3.bf16.msra.mxu0 %v6584_v35  ;;  %5190 = vmatprep.mubr.msk.bf16.mxu0 %vm592_vm3, %v3077_v5  ;;  %v3872_v35 = vld [vmem:[#allocation8 + $0xb0] sm:$0xff]  ;;  %v3124_v5 = vshrl.u32 %v6618_v55, 16  ;;  %v3104_v22 = vsel %vm3042_vm7, %v3094_v32, %v3103_v51  ;;  %v3121_v32 = vor.u32 %v3120_v26, %v3117_v18  ;;  %v3144_v56 = vrot.slane %v3142_v0, 2 }
 0x14f   : > { %3998 = vperm.xlu0 %5645, %v3872_v35   ;;  %4003 = vperm.xlu1 %5646, %v3873_v30   ;;  %v3113_v34 = vsel %vm3042_vm7, %v3103_v51, %v3112_v19  ;;  %v5716_v51 = vld [vmem:[%s6197_s28 + $0x10] sm:$0xff]   ;;  %v3160_v18 = vshrl.u32 %v6655_v38, 16  ;;  %v3163_v26 = vshll.u32 %v6655_v38, 16 }
 0x150   : > { %v3126_v31 = vrot.slane %v3124_v5, 2  ;;  %v3147_v5 = vrot.slane %v3145_v57, 3  ;;  %v3885_v57 = vld [vmem:[#allocation8 + $0x118] sm:$0xff] }
 0x151   : > { %5017 = vmatmul.mubr.msk.bf16.gmra.mrb[20].mxu1 %vm592_vm3, %v1077_v23  ;;  %v1084_v23 = vrot.slane %v6430_v54, 1  ;;  %v3133_v54 = vshrl.u32 %v6632_v13, 16  ;;  %v3165_v0 = vrot.slane %v3163_v26, 3 }
 0x152   : > { %5020 = vmatprep.mubr.msk.bf16.mxu1 %vm592_vm3, %v1079_v63  ;;  %v1086_v63 = vrot.slane %v6435_v25, 1  ;;  %v3136_v25 = vshll.u32 %v6632_v13, 16 }
 0x153   : > { %4008 = vperm.xlu0 %5645, %v3874_v59   ;;  %4013 = vperm.xlu1 %5646, %v3875_v44   ;;  %v1085_v35 = vsel %vm1052_vm6, %v1082_v61, %v1084_v23  ;;  %v3879_v61 = vld [vmem:[#allocation8 + $0xe8] sm:$0xff]  ;;  %v3135_v1 = vrot.slane %v3133_v54, 2  ;;  %v1496_v59 = vrot.slane %v6218_v7, 1  ;;  %v3882_v44 = vld [vmem:[#allocation8 + $0x100] sm:$0xff] }
 0x154   : > { %v1087_v53 = vsel %vm1052_vm6, %v1084_v23, %v1086_v63  ;;  %v3138_v30 = vrot.slane %v3136_v25, 3  ;;  %v1089_v40 = vsel %vm1052_vm6, %v1086_v63, %v1088_v9  ;;  %v3154_v23 = vshll.u32 %v6650_v24, 16  ;;  %v3883_v63 = vld [vmem:[#allocation8 + $0x108] sm:$0xff] }
 0x155   : > { %5191 = vmatmul.mubr.msk.bf16.gmra.mrb[4].mxu0 %vm592_vm3, %v3086_v47  ;;  %v3130_v47 = vor.u32 %v3129_v2, %v3126_v31  ;;  %v5717_v31 = vld [vmem:[%s6197_s28 + $0x18] sm:$0xff]   ;;  %v5718_v54 = vld [vmem:[%s6197_s28 + $0x20] sm:$0xff]   ;;  %v3162_v25 = vrot.slane %v3160_v18, 2  ;;  %v3169_v9 = vshrl.u32 %v6669_v12, 16  ;;  %v3190_v18 = vshll.u32 %v6688_v60, 16 }
 0x156   : > { %5194 = vmatprep.mubr.msk.bf16.mxu0 %vm592_vm3, %v3095_v17  ;;  %v3880_v17 = vld [vmem:[#allocation8 + $0xf0] sm:$0xff]  ;;  %v1499_v2 = vrot.slane %v5717_v31, 1 }
 0x157   : > { %4018 = vperm.xlu0 %5645, %v3876_v6   ;;  %4023 = vperm.xlu1 %5646, %v3877_v46   ;;  %v3131_v4 = vsel %vm3042_vm7, %v3121_v32, %v3130_v47  ;;  %v3151_v6 = vshrl.u32 %v6650_v24, 16  ;;  %v5721_v31 = vld [vmem:[%s6197_s28 + $0x38] sm:$0xff]  }
 0x159   : > { %5021 = vmatmul.mubr.msk.bf16.gmra.mrb[24].mxu1 %vm592_vm3, %v1081_v41  ;;  %v3122_v41 = vsel %vm3042_vm7, %v3112_v19, %v3121_v32  ;;  %v3139_v19 = vor.u32 %v3138_v30, %v3135_v1  ;;  %v1501_v32 = vrot.slane %v5718_v54, 1  ;;  %v3172_v1 = vshll.u32 %v6669_v12, 16  ;;  %v5722_v54 = vld [vmem:[%s6197_s28 + $0x40] sm:$0xff]  }
 0x15a   : > { %5024 = vmatprep.mubr.msk.bf16.mxu1 %vm592_vm3, %v1083_v49  ;;  %v1497_v49 = vrot.slane %v5716_v51, 1  ;;  %v3178_v30 = vshrl.u32 %v6675_v20, 16  ;;  %v5719_v51 = vld [vmem:[%s6197_s28 + $0x28] sm:$0xff]  }
 0x15b   : > { %4028 = vperm.xlu0 %5645, %v3878_v27   ;;  %4033 = vperm.xlu1 %5646, %v3879_v61   ;;  %v3140_v46 = vsel %vm3042_vm7, %v3130_v47, %v3139_v19  ;;  %v3153_v27 = vrot.slane %v3151_v6, 2  ;;  %v1502_v47 = vsel %vm1052_vm6, %v1499_v2, %v1501_v32 }
 0x15c   : > { %v1498_v7 = vsel %vm1052_vm6, %v1496_v59, %v1497_v49  ;;  %v1500_v61 = vsel %vm1052_vm6, %v1497_v49, %v1499_v2  ;;  %v3181_v59 = vshll.u32 %v6675_v20, 16  ;;  %v1503_v49 = vrot.slane %v5719_v51, 1 }
 0x15d   : > { %5195 = vmatmul.mubr.msk.bf16.gmra.mrb[8].mxu0 %vm592_vm3, %v3104_v22  ;;  %v3148_v22 = vor.u32 %v3147_v5, %v3144_v56  ;;  %v3171_v56 = vrot.slane %v3169_v9, 2  ;;  %v3174_v5 = vrot.slane %v3172_v1, 3  ;;  %v1507_v2 = vrot.slane %v5721_v31, 1 }
 0x15e   : > { %5198 = vmatprep.mubr.msk.bf16.mxu0 %vm592_vm3, %v3113_v34  ;;  %v3884_v34 = vld [vmem:[#allocation8 + $0x110] sm:$0xff]  ;;  %v1504_v6 = vsel %vm1052_vm6, %v1501_v32, %v1503_v49  ;;  %v1509_v32 = vrot.slane %v5722_v54, 1 }
 0x15f   : > { %4038 = vperm.xlu0 %5645, %v3880_v17   ;;  %4043 = vperm.xlu1 %5646, %v3881_v37   ;;  %v5720_v37 = vld [vmem:[%s6197_s28 + $0x30] sm:$0xff]  }
 0x161   : > { %5025 = vmatmul.mubr.msk.bf16.gmra.mrb[28].mxu1 %vm592_vm3, %v1085_v35  ;;  %v3156_v35 = vrot.slane %v3154_v23, 3 }
 0x162   : > { %5028 = vmatprep.mubr.msk.bf16.mxu1 %vm592_vm3, %v1087_v53  ;;  %v3149_v53 = vsel %vm3042_vm7, %v3139_v19, %v3148_v22  ;;  %v3180_v19 = vrot.slane %v3178_v30, 2  ;;  %v3494_v30 = vld [vmem:[%s6197_s28 + $0x10] sm:$0x8] }
 0x163   : > { %4048 = vperm.xlu0 %5645, %v3882_v44   ;;  %4053 = vperm.xlu1 %5646, %v3883_v63   ;;  %v3157_v17 = vor.u32 %v3156_v35, %v3153_v27  ;;  %v1505_v44 = vrot.slane %v5720_v37, 1  ;;  %v3196_v63 = vshrl.u32 %v6692_v45, 16  ;;  %v3192_v35 = vrot.slane %v3190_v18, 3 }
 0x165   : > { %5199 = vmatmul.mubr.msk.bf16.gmra.mrb[12].mxu0 %vm592_vm3, %v3122_v41  ;;  %v3166_v41 = vor.u32 %v3165_v0, %v3162_v25  ;;  %v1506_v23 = vsel %vm1052_vm6, %v1503_v49, %v1505_v44  ;;  %v3198_v0 = vrot.slane %v3196_v63, 2 }
 0x166   : > { %5202 = vmatprep.mubr.msk.bf16.mxu0 %vm592_vm3, %v3131_v4  ;;  %v3158_v4 = vsel %vm3042_vm7, %v3148_v22, %v3157_v17  ;;  %v3187_v22 = vshrl.u32 %v6688_v60, 16 }
 0x167   : > { %4058 = vperm.xlu0 %5645, %v3884_v34   ;;  %4063 = vperm.xlu1 %5646, %v3885_v57   ;;  %v3199_v34 = vshll.u32 %v6692_v45, 16 }
 0x168   : > { %v3189_v27 = vrot.slane %v3187_v22, 2  ;;  %v5725_v22 = vld [vmem:[%s6197_s28 + $0x58] sm:$0xff]  }
 0x169   : > { %5029 = vmatmul.mubr.msk.bf16.gmra.mrb[32].mxu1 %vm592_vm3, %v1089_v40  ;;  %v3167_v40 = vsel %vm3042_vm7, %v3157_v17, %v3166_v41  ;;  %v3201_v57 = vrot.slane %v3199_v34, 3  ;;  %v1515_v18 = vrot.slane %v5725_v22, 1 }
 0x16a   : > { %5034 = vmatprep.mubr.msk.bf16.mxu1 %vm592_vm3, %v1498_v7  ;;  %v3183_v7 = vrot.slane %v3181_v59, 3  ;;  %v3193_v17 = vor.u32 %v3192_v35, %v3189_v27  ;;  %v5723_v59 = vld [vmem:[%s6197_s28 + $0x48] sm:$0xff]   ;;  %v1521_v35 = vrot.slane %v6488_v36, 1 }
 0x16b   : > { %v1511_v51 = vrot.slane %v5723_v59, 1  ;;  %v1922_v59 = vshrl.u32 %v6472_v48, 16 }
 0x16c   : > { %v3184_v26 = vor.u32 %v3183_v7, %v3180_v19 }
 0x16d   : > { %5203 = vmatmul.mubr.msk.bf16.gmra.mrb[16].mxu0 %vm592_vm3, %v3140_v46  ;;  %v1512_v19 = vsel %vm1052_vm6, %v1509_v32, %v1511_v51 }
 0x16e   : > { %5206 = vmatprep.mubr.msk.bf16.mxu0 %vm592_vm3, %v3149_v53  ;;  %v6827_v53 = vld [vmem:[%s6197_s28 + $0xa0] ss:$0 sps:$4 sm:$0x77]   ;;  %v3194_v49 = vsel %vm3042_vm7, %v3184_v26, %v3193_v17 }
 0x16f   : > { %v3205_v9 = vshrl.u32 %v6827_v53, 16  ;;  %v3208_v1 = vshll.u32 %v6827_v53, 16 }
 0x171   : > { %5035 = vmatmul.mubr.msk.bf16.vlgmr.msra.gmra.mrb[0].mxu1 %vm592_vm3, %v1500_v61  ;;  %v1508_v61 = vsel %vm1052_vm6, %v1505_v44, %v1507_v2 }
 0x172   : > { %5261 = vmatpush3.bf16.msra.mxu1 %v6224_v10  ;;  %5038 = vmatprep.mubr.msk.bf16.mxu1 %vm592_vm3, %v1502_v47  ;;  %v3175_v10 = vor.u32 %v3174_v5, %v3171_v56  ;;  %v1510_v47 = vsel %vm1052_vm6, %v1507_v2, %v1509_v32  ;;  %v3210_v56 = vrot.slane %v3208_v1, 3  ;;  %v5724_v5 = vld [vmem:[%s6197_s28 + $0x50] sm:$0xff]   ;;  %v3505_v2 = vrot.slane %v6565_v21, 3 }
 0x173   : > { %v1513_v37 = vrot.slane %v5724_v5, 1  ;;  %v3507_v21 = vrot.slane %v6577_v29, 3  ;;  %v1527_v1 = vrot.slane %v6521_v50, 1  ;;  %v1924_v5 = vrot.slane %v1922_v59, 1 }
 0x174   : > { %v3176_v46 = vsel %vm3042_vm7, %v3166_v41, %v3175_v10  ;;  %v3185_v25 = vsel %vm3042_vm7, %v3175_v10, %v3184_v26  ;;  %v3202_v41 = vor.u32 %v3201_v57, %v3198_v0  ;;  %v1517_v26 = vrot.slane %v6472_v48, 1 }
 0x175   : > { %5207 = vmatmul.mubr.msk.bf16.gmra.mrb[20].mxu0 %vm592_vm3, %v3158_v4  ;;  %v3207_v4 = vrot.slane %v3205_v9, 2  ;;  %v1516_v34 = vsel %vm1052_vm6, %v1513_v37, %v1515_v18  ;;  %v1523_v0 = vrot.slane %v6504_v39, 1  ;;  %v3508_v57 = vsel %vm3499_vm8, %v3505_v2, %v3507_v21 }
 0x176   : > { %5210 = vmatprep.mubr.msk.bf16.mxu0 %vm592_vm3, %v3167_v40  ;;  %v3203_v44 = vsel %vm3042_vm7, %v3193_v17, %v3202_v41  ;;  %v4722_v40 = vcombine.low %v3494_v30, %v6535_v42  ;;  %v1518_v31 = vsel %vm1052_vm6, %v1515_v18, %v1517_v26  ;;  %v3513_v9 = vrot.slane %v6602_v16, 3 }
 0x177   : > { %v3211_v7 = vor.u32 %v3210_v56, %v3207_v4  ;;  %v1524_v29 = vsel %vm1052_vm6, %v1521_v35, %v1523_v0  ;;  %v1529_v30 = vrot.slane %v6525_v52, 1  ;;  %v3515_v4 = vrot.slane %v6614_v14, 3 }
 0x178   : > { %v3500_v10 = vrot.slane %v4722_v40, 3  ;;  %v1931_v40 = vshrl.u32 %v6484_v33, 16  ;;  %v1940_v14 = vshrl.u32 %v6488_v36, 16  ;;  %v3529_v59 = vrot.slane %v6675_v20, 3 }
 0x179   : > { %5039 = vmatmul.mubr.msk.bf16.gmra.mrb[4].mxu1 %vm592_vm3, %v1504_v6  ;;  %v1514_v6 = vsel %vm1052_vm6, %v1511_v51, %v1513_v37  ;;  %v3212_v42 = vsel %vm3042_vm7, %v3202_v41, %v3211_v7  ;;  %v1925_v51 = vshll.u32 %v6472_v48, 16  ;;  %v1530_v56 = vsel %vm1052_vm6, %v1527_v1, %v1529_v30 }
 0x17a   : > { %5042 = vmatprep.mubr.msk.bf16.mxu1 %vm592_vm3, %v1506_v23  ;;  %v3501_v23 = vrot.slane %v6548_v3, 3  ;;  %v3503_v3 = vrot.slane %v6561_v15, 3  ;;  %v3516_v7 = vsel %vm3499_vm8, %v3513_v9, %v3515_v4  ;;  %v1933_v22 = vrot.slane %v1931_v40, 1 }
 0x17b   : > { %v1927_v37 = vrot.slane %v1925_v51, 2  ;;  %v1985_v51 = vshrl.u32 %v6541_v62, 16  ;;  %v3533_v62 = vrot.slane %v6692_v45, 3 }
 0x17c   : > { %v3502_v63 = vsel %vm3499_vm8, %v3500_v10, %v3501_v23  ;;  %v3504_v27 = vsel %vm3499_vm8, %v3501_v23, %v3503_v3  ;;  %v3506_v54 = vsel %vm3499_vm8, %v3503_v3, %v3505_v2  ;;  %v1943_v10 = vshll.u32 %v6488_v36, 16 }
 0x17d   : > { %5211 = vmatmul.mubr.msk.bf16.gmra.mrb[24].mxu0 %vm592_vm3, %v3176_v46  ;;  %v1519_v46 = vrot.slane %v6484_v33, 1  ;;  %v1949_v3 = vshrl.u32 %v6504_v39, 16 }
 0x17e   : > { %5214 = vmatprep.mubr.msk.bf16.mxu0 %vm592_vm3, %v3185_v25  ;;  %v3509_v25 = vrot.slane %v6581_v8, 3  ;;  %v3511_v8 = vrot.slane %v6598_v58, 3 }
 0x17f   : > { %v1520_v15 = vsel %vm1052_vm6, %v1517_v26, %v1519_v46  ;;  %v1522_v32 = vsel %vm1052_vm6, %v1519_v46, %v1521_v35  ;;  %v1942_v26 = vrot.slane %v1940_v14, 1  ;;  %v1951_v35 = vrot.slane %v1949_v3, 1 }
 0x180   : > { %v3510_v17 = vsel %vm3499_vm8, %v3507_v21, %v3509_v25  ;;  %v3512_v41 = vsel %vm3499_vm8, %v3509_v25, %v3511_v8  ;;  %v3514_v58 = vsel %vm3499_vm8, %v3511_v8, %v3513_v9  ;;  %v3525_v25 = vrot.slane %v6655_v38, 3 }
 0x181   : > { %5043 = vmatmul.mubr.msk.bf16.gmra.mrb[8].mxu1 %vm592_vm3, %v1508_v61  ;;  %v1525_v61 = vrot.slane %v6509_v43, 1 }
 0x182   : > { %5046 = vmatprep.mubr.msk.bf16.mxu1 %vm592_vm3, %v1510_v47 }
 0x183   : > { %v1526_v47 = vsel %vm1052_vm6, %v1523_v0, %v1525_v61  ;;  %v1528_v16 = vsel %vm1052_vm6, %v1525_v61, %v1527_v1  ;;  %v1967_v0 = vshrl.u32 %v6521_v50, 16 }
 0x185   : > { %5215 = vmatmul.mubr.msk.bf16.gmra.mrb[28].mxu0 %vm592_vm3, %v3194_v49  ;;  %v5715_v49 = vld [vmem:[%s6197_s28 + $0x98] ss:$0 sps:$4 sm:$0x11]  }
 0x186   : > { %5218 = vmatprep.mubr.msk.bf16.mxu0 %vm592_vm3, %v3203_v44  ;;  %v3517_v44 = vrot.slane %v6618_v55, 3  ;;  %v1531_v48 = vrot.slane %v5715_v49, 1 }
 0x188   : > { %v3518_v23 = vsel %vm3499_vm8, %v3515_v4, %v3517_v44  ;;  %v1532_v55 = vsel %vm1052_vm6, %v1529_v30, %v1531_v48 }
 0x189   : > { %5047 = vmatmul.mubr.msk.bf16.gmra.mrb[12].mxu1 %vm592_vm3, %v1512_v19  ;;  %v1934_v19 = vshll.u32 %v6484_v33, 16 }
 0x18a   : > { %5050 = vmatprep.mubr.msk.bf16.mxu1 %vm592_vm3, %v1514_v6  ;;  %v1928_v6 = vor.u32 %v1927_v37, %v1924_v5  ;;  %v1987_v5 = vrot.slane %v1985_v51, 1  ;;  %v3531_v37 = vrot.slane %v6688_v60, 3  ;;  %v3535_v60 = vrot.slane %v6827_v53, 3 }
 0x18b   : > { %v1936_v18 = vrot.slane %v1934_v19, 2 }
 0x18c   : > { %v1929_v33 = vsel %vm1822_vm2, %v6374_v11, %v1928_v6  ;;  %v1961_v11 = vshll.u32 %v6509_v43, 16  ;;  %v3532_v40 = vsel %vm3499_vm8, %v3529_v59, %v3531_v37  ;;  %v3534_v19 = vsel %vm3499_vm8, %v3531_v37, %v3533_v62 }
 0x18d   : > { %5219 = vmatmul.mubr.msk.bf16.gmra.mrb[32].mxu0 %vm592_vm3, %v3212_v42  ;;  %v3519_v42 = vrot.slane %v6632_v13, 3  ;;  %v1937_v36 = vor.u32 %v1936_v18, %v1933_v22  ;;  %v1958_v13 = vshrl.u32 %v6509_v43, 16  ;;  %v3536_v45 = vsel %vm3499_vm8, %v3533_v62, %v3535_v60 }
 0x18e   : > { %5224 = vmatprep.mubr.msk.bf16.mxu0 %vm592_vm3, %v3502_v63  ;;  %v1945_v63 = vrot.slane %v1943_v10, 2 }
 0x18f   : > { %v3520_v2 = vsel %vm3499_vm8, %v3517_v44, %v3519_v42  ;;  %v1960_v21 = vrot.slane %v1958_v13, 1 }
 0x190   : > { %v1946_v46 = vor.u32 %v1945_v63, %v1942_v26 }
 0x191   : > { %5051 = vmatmul.mubr.msk.bf16.gmra.mrb[16].mxu1 %vm592_vm3, %v1516_v34  ;;  %v3521_v34 = vrot.slane %v6637_v28, 3  ;;  %v1938_v28 = vsel %vm1822_vm2, %v1928_v6, %v1937_v36 }
 0x192   : > { %5054 = vmatprep.mubr.msk.bf16.mxu1 %vm592_vm3, %v1518_v31  ;;  %v1952_v31 = vshll.u32 %v6504_v39, 16  ;;  %v1947_v39 = vsel %vm1822_vm2, %v1937_v36, %v1946_v46 }
 0x195   : > { %5225 = vmatmul.mubr.msk.bf16.vlgmr.msra.gmra.mrb[0].mxu0 %vm592_vm3, %v3504_v27  ;;  %v3522_v27 = vsel %vm3499_vm8, %v3519_v42, %v3521_v34 }
 0x196   : > { %5228 = vmatprep.mubr.msk.bf16.mxu0 %vm592_vm3, %v3506_v54  ;;  %v1954_v54 = vrot.slane %v1952_v31, 2 }
 0x197   : > { %v3899_v22 = vpop.permute.xlu1 %3898 }
 0x198   : > { %v1955_v43 = vor.u32 %v1954_v54, %v1951_v35 }
 0x199   : > { %5055 = vmatmul.mubr.msk.bf16.gmra.mrb[20].mxu1 %vm592_vm3, %v1520_v15  ;;  %v3523_v15 = vrot.slane %v6650_v24, 3  ;;  %v1976_v24 = vshrl.u32 %v6525_v52, 16 }
 0x19a   : > { %5058 = vmatprep.mubr.msk.bf16.mxu1 %vm592_vm3, %v1522_v32  ;;  %v1963_v32 = vrot.slane %v1961_v11, 2  ;;  %v1956_v38 = vsel %vm1822_vm2, %v1946_v46, %v1955_v43 }
 0x19b   : > { %v3524_v61 = vsel %vm3499_vm8, %v3521_v34, %v3523_v15  ;;  %v3526_v8 = vsel %vm3499_vm8, %v3523_v15, %v3525_v25  ;;  %v3904_v53 = vpop.permute.xlu1 %3903 }
 0x19d   : > { %5229 = vmatmul.mubr.msk.bf16.gmra.mrb[4].mxu0 %vm592_vm3, %v3508_v57  ;;  %v1970_v57 = vshll.u32 %v6521_v50, 16  ;;  %v3527_v50 = vrot.slane %v6669_v12, 3 }
 0x19e   : > { %5232 = vmatprep.mubr.msk.bf16.mxu0 %vm592_vm3, %v3510_v17  ;;  %v1964_v17 = vor.u32 %v1963_v32, %v1960_v21 }
 0x19f   : > { %v1972_v9 = vrot.slane %v1970_v57, 2  ;;  %v3528_v49 = vsel %vm3499_vm8, %v3525_v25, %v3527_v50  ;;  %v3530_v12 = vsel %vm3499_vm8, %v3527_v50, %v3529_v59 }
 0x1a0   : > { %v1965_v1 = vsel %vm1822_vm2, %v1955_v43, %v1964_v17 }
 0x1a1   : > { %5059 = vmatmul.mubr.msk.bf16.gmra.mrb[24].mxu1 %vm592_vm3, %v1524_v29  ;;  %v1979_v29 = vshll.u32 %v6525_v52, 16 }
 0x1a2   : > { %5062 = vmatprep.mubr.msk.bf16.mxu1 %vm592_vm3, %v1526_v47  ;;  %v1969_v47 = vrot.slane %v1967_v0, 1 }
 0x1a3   : > { %v1981_v30 = vrot.slane %v1979_v29, 2 }
 0x1a4   : > { %v1973_v52 = vor.u32 %v1972_v9, %v1969_v47 }
 0x1a5   : > { %5233 = vmatmul.mubr.msk.bf16.gmra.mrb[8].mxu0 %vm592_vm3, %v3512_v41  ;;  %v1978_v41 = vrot.slane %v1976_v24, 1 }
 0x1a6   : > { %5236 = vmatprep.mubr.msk.bf16.mxu0 %vm592_vm3, %v3514_v58  ;;  %v5726_v58 = vld [vmem:[%s6197_s28 + $0x98] ss:$0 sps:$4 sm:$0x33]  }
 0x1a7   : > { %v1982_v4 = vor.u32 %v1981_v30, %v1978_v41 }
 0x1a9   : > { %5063 = vmatmul.mubr.msk.bf16.gmra.mrb[28].mxu1 %vm592_vm3, %v1528_v16  ;;  %v1988_v16 = vshll.u32 %v5726_v58, 16  ;;  %v1983_v44 = vsel %vm1822_vm2, %v1973_v52, %v1982_v4 }
 0x1aa   : > { %5066 = vmatprep.mubr.msk.bf16.mxu1 %vm592_vm3, %v1530_v56  ;;  %v1974_v56 = vsel %vm1822_vm2, %v1964_v17, %v1973_v52  ;;  %v7011_v17 = vld [vmem:[#allocation7] ss:$0 sm:$0xff] }
 0x1ab   : > { %v1990_v20 = vrot.slane %v1988_v16, 2 }
 0x1ad   : > { %5237 = vmatmul.mubr.msk.bf16.gmra.mrb[12].mxu0 %vm592_vm3, %v3516_v7  ;;  %v1991_v48 = vor.u32 %v1990_v20, %v1987_v5 }
 0x1ae   : > { %5240 = vmatprep.mubr.msk.bf16.mxu0 %vm592_vm3, %v3518_v23  ;;  %v3889_v23 = vpop.permute.xlu0 %3888 }
 0x1af   : > { %v1992_v7 = vsel %vm1822_vm2, %v1982_v4, %v1991_v48 }
 0x1b1   : > { %5067 = vmatmul.mubr.msk.bf16.gmra.mrb[32].mxu1 %vm592_vm3, %v1532_v55 }
 0x1b2   : > { %5092 = vmatprep.mubr.msk.bf16.mxu1 %vm592_vm3, %v1929_v33  ;;  %v3894_v42 = vpop.permute.xlu0 %3893 }
 0x1b5   : > { %5241 = vmatmul.mubr.msk.bf16.gmra.mrb[16].mxu0 %vm592_vm3, %v3520_v2  ;;  %v6978_v2 = vpop.permute.xlu1 %3913 }
 0x1b6   : > { %5244 = vmatprep.mubr.msk.bf16.mxu0 %vm592_vm3, %v3522_v27  ;;  %v6970_v34 = vpop.permute.xlu0 %3908 }
 0x1b9   : > { %5093 = vmatmul.mubr.msk.bf16.vlgmr.msra.gmra.mrb[20].mxu1 %vm592_vm3, %v1938_v28  ;;  %v6986_v27 = vpop.permute.xlu1 %3923 }
 0x1ba   : > { %5096 = vmatprep.mubr.msk.bf16.mxu1 %vm592_vm3, %v1947_v39  ;;  %v6982_v13 = vpop.permute.xlu0 %3918 }
 0x1bd   : > { %5245 = vmatmul.mubr.msk.bf16.gmra.mrb[20].mxu0 %vm592_vm3, %v3524_v61  ;;  %v6996_v39 = vpop.permute.xlu1 %3933 }
 0x1be   : > { %5248 = vmatprep.mubr.msk.bf16.mxu0 %vm592_vm3, %v3526_v8  ;;  %v6992_v54 = vpop.permute.xlu0 %3928 }
 0x1c1   : > { %5097 = vmatmul.mubr.msk.bf16.gmra.mrb[24].mxu1 %vm592_vm3, %v1956_v38  ;;  %v7008_v57 = vpop.permute.xlu1 %3943 }
 0x1c2   : > { %5100 = vmatprep.mubr.msk.bf16.mxu1 %vm592_vm3, %v1965_v1  ;;  %v7000_v32 = vpop.permute.xlu0 %3938 }
 0x1c5   : > { %5249 = vmatmul.mubr.msk.bf16.gmra.mrb[24].mxu0 %vm592_vm3, %v3528_v49  ;;  %v7018_v51 = vpop.permute.xlu1 %3953 }
 0x1c6   : > { %5252 = vmatprep.mubr.msk.bf16.mxu0 %vm592_vm3, %v3530_v12  ;;  %v7013_v8 = vpop.permute.xlu0 %3948 }
 0x1c9   : > { %5101 = vmatmul.mubr.msk.bf16.gmra.mrb[28].mxu1 %vm592_vm3, %v1974_v56 }
 0x1ca   : > { %5104 = vmatprep.mubr.msk.bf16.mxu1 %vm592_vm3, %v1983_v44  ;;  %v7025_v4 = vpop.permute.xlu0 %3958 }
 0x1cd   : > { %5253 = vmatmul.mubr.msk.bf16.gmra.mrb[28].mxu0 %vm592_vm3, %v3532_v40 }
 0x1ce   : > { %5256 = vmatprep.mubr.msk.bf16.mxu0 %vm592_vm3, %v3534_v19 }
 0x1d1   : > { %5105 = vmatmul.mubr.msk.bf16.gmra.mrb[32].mxu1 %vm592_vm3, %v1992_v7 }
 0x1d5   : > { %5257 = vmatmul.mubr.msk.bf16.gmra.mrb[32].mxu0 %vm592_vm3, %v3536_v45 }
 0x244   : > { %v5036_v6 = vpop.f32.mrb[0].mxu1 }
 0x245   : > { %v1637_v14 = vpop.f32.mrb[1].mxu1 }
 0x246   : > { %v5037_v10 = vpop.f32.mrb[2].mxu1 }
 0x247   : > { %v1640_v55 = vpop.f32.mrb[3].mxu1 }
 0x24c   : > { %v5040_v18 = vpop.f32.mrb[4].mxu1 }
 0x24d   : > { %v1653_v33 = vpop.f32.mrb[5].mxu1 }
 0x24e   : > { %v6966_v26 = vpop.f32.mrb[6].mxu1 }
 0x24f   : > { %v6968_v63 = vpop.f32.mrb[7].mxu1 }
 0x254   : > { %v6972_v36 = vpop.f32.mrb[8].mxu1 }
 0x255   : > { %v6974_v3 = vpop.f32.mrb[9].mxu1 }
 0x256   : > { %v6976_v31 = vpop.f32.mrb[10].mxu1 }
 0x257   : > { %v6980_v46 = vpop.f32.mrb[11].mxu1 }
 0x25c   : > { %v6984_v11 = vpop.f32.mrb[12].mxu1 }
 0x25d   : > { %v6988_v28 = vpop.f32.mrb[13].mxu1 }
 0x25e   : > { %v6990_v35 = vpop.f32.mrb[14].mxu1 }
 0x25f   : > { %v6994_v15 = vpop.f32.mrb[15].mxu1 }
 0x264   : > { %v6998_v21 = vpop.f32.mrb[16].mxu1 }
 0x265   : > { %v7002_v25 = vpop.f32.mrb[17].mxu1 }
 0x266   : > { %v7004_v43 = vpop.f32.mrb[18].mxu1 }
 0x267   : > { %v7006_v0 = vpop.f32.mrb[19].mxu1 }
 0x268   : > { %v5226_v61 = vpop.f32.mrb[0].mxu0 }
 0x269   : > { %v5262_v24 = vadd.f32 %v5226_v61, %v5036_v6  ;;  %v3628_v29 = vpop.f32.mrb[1].mxu0 }
 0x26a   : > { %v5263_v38 = vadd.f32 %v3628_v29, %v1637_v14  ;;  %v5227_v47 = vpop.f32.mrb[2].mxu0 }
 0x26b   : > { %v3816_v9 = vadd.f32 %v5262_v24, %v7011_v17  ;;  %v5264_v50 = vadd.f32 %v5227_v47, %v5037_v10  ;;  %v3631_v1 = vpop.f32.mrb[3].mxu0 }
 0x26c   : > { %v3814_v41 = vadd.f32 %v5263_v38, %v7011_v17  ;;  %v5265_v30 = vadd.f32 %v3631_v1, %v1640_v55  ;;  %v7038_v55 = vpop.permute.xlu1 %3963 }
 0x26d   : > { %v4068_v59 = vmul.f32 %v3899_v22, %v3816_v9  ;;  %v3817_v52 = vadd.f32 %v5264_v50, %v7011_v17 }
 0x26e   : > { %v4066_v58 = vmul.f32 %v3889_v23, %v3814_v41  ;;  %v3815_v16 = vadd.f32 %v5265_v30, %v7011_v17 }
 0x26f   : > { %4105 = vst.msk [vmem:[%s7021_s26 + $0x10] sm:$0xff] %vm4102_vm9, %v4068_v59  ;;  %v4069_v49 = vmul.f32 %v3904_v53, %v3817_v52  ;;  %v4142_v20 = vsel %vm4102_vm9, %v4068_v59, 0.0  ;;  %v4220_v37 = vmul.f32 %v4068_v59, %v4068_v59 }
 0x270   : > { %4103 = vst.msk [vmem:[%s7021_s26] sm:$0xff] %vm4102_vm9, %v4066_v58  ;;  %v4218_v12 = vmul.f32 %v4066_v58, %v4066_v58  ;;  %v4067_v56 = vmul.f32 %v3894_v42, %v3815_v16  ;;  %v5230_v5 = vpop.f32.mrb[4].mxu0  ;;  %v4139_v48 = vsel %vm4102_vm9, %v4066_v58, 0.0 }
 0x271   : > { %4106 = vst.msk [vmem:[%s7021_s26 + $0x18] sm:$0xff] %vm4102_vm9, %v4069_v49  ;;  %v5266_v44 = vadd.f32 %v5230_v5, %v5040_v18  ;;  %v3644_v62 = vpop.f32.mrb[5].mxu0  ;;  %v4221_v45 = vmul.f32 %v4069_v49, %v4069_v49  ;;  %v4257_v38 = vsel %vm4102_vm9, %v4220_v37, 0.0  ;;  %v4144_v47 = vsel %vm4102_vm9, %v4069_v49, 0.0 }
 0x272   : > { %4104 = vst.msk [vmem:[%s7021_s26 + $0x8] sm:$0xff] %vm4102_vm9, %v4067_v56  ;;  %v4140_v40 = vsel %vm4102_vm9, %v4067_v56, 0.0  ;;  %v4219_v19 = vmul.f32 %v4067_v56, %v4067_v56  ;;  %v5267_v7 = vadd.f32 %v3644_v62, %v1653_v33  ;;  %v5231_v60 = vpop.f32.mrb[6].mxu0  ;;  %v4254_v22 = vsel %vm4102_vm9, %v4218_v12, 0.0  ;;  %v7061_v56 = vpop.permute.xlu1 %3973 }
 0x273   : > { %v4141_v6 = vadd.f32 %v4140_v40, %v4139_v48  ;;  %v3820_v14 = vadd.f32 %v5266_v44, %v7011_v17  ;;  %v5268_v10 = vadd.f32 %v5231_v60, %v6966_v26  ;;  %v3647_v23 = vpop.f32.mrb[7].mxu0  ;;  %v7046_v26 = vpop.permute.xlu0 %3968  ;;  %v4259_v1 = vsel %vm4102_vm9, %v4221_v45, 0.0 }
 0x274   : > { %v4255_v18 = vsel %vm4102_vm9, %v4219_v19, 0.0  ;;  %v3818_v42 = vadd.f32 %v5267_v7, %v7011_v17  ;;  %v5269_v33 = vadd.f32 %v3647_v23, %v6968_v63 }
 0x275   : > { %v4143_v53 = vadd.f32 %v4142_v20, %v4141_v6  ;;  %v4256_v61 = vadd.f32 %v4255_v18, %v4254_v22  ;;  %v4072_v24 = vmul.f32 %v6982_v13, %v3820_v14  ;;  %v3821_v29 = vadd.f32 %v5268_v10, %v7011_v17 }
 0x276   : > { %v4070_v9 = vmul.f32 %v6970_v34, %v3818_v42  ;;  %v3819_v50 = vadd.f32 %v5269_v33, %v7011_v17 }
 0x277   : > { %v4258_v41 = vadd.f32 %v4257_v38, %v4256_v61  ;;  %4109 = vst.msk [vmem:[%s7021_s26 + $0x30] sm:$0xff] %vm4102_vm9, %v4072_v24  ;;  %v4145_v63 = vadd.f32 %v4144_v47, %v4143_v53  ;;  %v4073_v59 = vmul.f32 %v6986_v27, %v3821_v29  ;;  %v4150_v5 = vsel %vm4102_vm9, %v4072_v24, 0.0  ;;  %v7071_v19 = vpop.permute.xlu0 %3978 }
 0x278   : > { %4107 = vst.msk [vmem:[%s7021_s26 + $0x20] sm:$0xff] %vm4102_vm9, %v4070_v9  ;;  %v4146_v13 = vsel %vm4102_vm9, %v4070_v9, 0.0  ;;  %v4222_v30 = vmul.f32 %v4070_v9, %v4070_v9  ;;  %v4071_v52 = vmul.f32 %v6978_v2, %v3819_v50  ;;  %v5234_v34 = vpop.f32.mrb[8].mxu0  ;;  %v4224_v20 = vmul.f32 %v4072_v24, %v4072_v24 }
 0x279   : > { %v4147_v58 = vadd.f32 %v4146_v13, %v4145_v63  ;;  %v4260_v16 = vadd.f32 %v4259_v1, %v4258_v41  ;;  %v5270_v49 = vadd.f32 %v5234_v34, %v6972_v36  ;;  %v3660_v12 = vpop.f32.mrb[9].mxu0  ;;  %4110 = vst.msk [vmem:[%s7021_s26 + $0x38] sm:$0xff] %vm4102_vm9, %v4073_v59  ;;  %v4152_v7 = vsel %vm4102_vm9, %v4073_v59, 0.0 }
 0x27a   : > { %v4261_v37 = vsel %vm4102_vm9, %v4222_v30, 0.0  ;;  %4108 = vst.msk [vmem:[%s7021_s26 + $0x28] sm:$0xff] %vm4102_vm9, %v4071_v52  ;;  %v4148_v27 = vsel %vm4102_vm9, %v4071_v52, 0.0  ;;  %v5235_v2 = vpop.f32.mrb[10].mxu0  ;;  %v4223_v48 = vmul.f32 %v4071_v52, %v4071_v52  ;;  %v5271_v60 = vadd.f32 %v3660_v12, %v6974_v3 }
 0x27b   : > { %v4262_v44 = vadd.f32 %v4261_v37, %v4260_v16  ;;  %v4149_v62 = vadd.f32 %v4148_v27, %v4147_v58  ;;  %v3824_v36 = vadd.f32 %v5270_v49, %v7011_v17  ;;  %v3663_v40 = vpop.f32.mrb[11].mxu0  ;;  %v5272_v45 = vadd.f32 %v5235_v2, %v6976_v31  ;;  %v7092_v1 = vpop.permute.xlu0 %3988 }
 0x27c   : > { %v5273_v6 = vadd.f32 %v3663_v40, %v6980_v46  ;;  %v4225_v14 = vmul.f32 %v4073_v59, %v4073_v59  ;;  %v4263_v23 = vsel %vm4102_vm9, %v4223_v48, 0.0  ;;  %v3822_v42 = vadd.f32 %v5271_v60, %v7011_v17  ;;  %v7085_v46 = vpop.permute.xlu1 %3983 }
 0x27d   : > { %v4151_v10 = vadd.f32 %v4150_v5, %v4149_v62  ;;  %v4076_v22 = vmul.f32 %v7000_v32, %v3824_v36  ;;  %v4264_v18 = vadd.f32 %v4263_v23, %v4262_v44  ;;  %v3825_v33 = vadd.f32 %v5272_v45, %v7011_v17 }
 0x27e   : > { %v3823_v53 = vadd.f32 %v5273_v6, %v7011_v17  ;;  %v4265_v3 = vsel %vm4102_vm9, %v4224_v20, 0.0  ;;  %v4074_v32 = vmul.f32 %v6992_v54, %v3822_v42  ;;  %v4267_v47 = vsel %vm4102_vm9, %v4225_v14, 0.0 }
 0x27f   : > { %4113 = vst.msk [vmem:[%s7021_s26 + $0x50] sm:$0xff] %vm4102_vm9, %v4076_v22  ;;  %v4153_v31 = vadd.f32 %v4152_v7, %v4151_v10  ;;  %v4266_v61 = vadd.f32 %v4265_v3, %v4264_v18  ;;  %v4077_v24 = vmul.f32 %v7008_v57, %v3825_v33  ;;  %v4158_v41 = vsel %vm4102_vm9, %v4076_v22, 0.0  ;;  %v7114_v40 = vpop.permute.xlu0 %3998 }
 0x280   : > { %v4075_v29 = vmul.f32 %v6996_v39, %v3823_v53  ;;  %v5238_v38 = vpop.f32.mrb[12].mxu0  ;;  %4111 = vst.msk [vmem:[%s7021_s26 + $0x40] sm:$0xff] %vm4102_vm9, %v4074_v32  ;;  %v4154_v63 = vsel %vm4102_vm9, %v4074_v32, 0.0  ;;  %v4226_v13 = vmul.f32 %v4074_v32, %v4074_v32  ;;  %v4228_v57 = vmul.f32 %v4076_v22, %v4076_v22  ;;  %v7108_v27 = vpop.permute.xlu1 %3993 }
 0x281   : > { %v5274_v9 = vadd.f32 %v5238_v38, %v6984_v11  ;;  %v3676_v50 = vpop.f32.mrb[13].mxu0  ;;  %v4268_v54 = vadd.f32 %v4267_v47, %v4266_v61  ;;  %4114 = vst.msk [vmem:[%s7021_s26 + $0x58] sm:$0xff] %vm4102_vm9, %v4077_v24  ;;  %v4155_v30 = vadd.f32 %v4154_v63, %v4153_v31  ;;  %v4229_v5 = vmul.f32 %v4077_v24, %v4077_v24 }
 0x282   : > { %4112 = vst.msk [vmem:[%s7021_s26 + $0x48] sm:$0xff] %vm4102_vm9, %v4075_v29  ;;  %v5239_v39 = vpop.f32.mrb[14].mxu0  ;;  %v4156_v11 = vsel %vm4102_vm9, %v4075_v29, 0.0  ;;  %v4227_v59 = vmul.f32 %v4075_v29, %v4075_v29  ;;  %v4269_v34 = vsel %vm4102_vm9, %v4226_v13, 0.0  ;;  %v5275_v16 = vadd.f32 %v3676_v50, %v6988_v28 }
 0x283   : > { %v3679_v52 = vpop.f32.mrb[15].mxu0  ;;  %v3828_v58 = vadd.f32 %v5274_v9, %v7011_v17  ;;  %v5276_v49 = vadd.f32 %v5239_v39, %v6990_v35  ;;  %v4270_v12 = vadd.f32 %v4269_v34, %v4268_v54  ;;  %v4157_v20 = vadd.f32 %v4156_v11, %v4155_v30  ;;  %v7140_v63 = vpop.permute.xlu0 %4008 }
 0x284   : > { %v4271_v37 = vsel %vm4102_vm9, %v4227_v59, 0.0  ;;  %v3826_v44 = vadd.f32 %v5275_v16, %v7011_v17  ;;  %v5277_v48 = vadd.f32 %v3679_v52, %v6994_v15  ;;  %v4273_v35 = vsel %vm4102_vm9, %v4228_v57, 0.0 }
 0x285   : > { %v4080_v2 = vmul.f32 %v7025_v4, %v3828_v58  ;;  %v3829_v62 = vadd.f32 %v5276_v49, %v7011_v17  ;;  %v4159_v28 = vadd.f32 %v4158_v41, %v4157_v20  ;;  %v4272_v36 = vadd.f32 %v4271_v37, %v4270_v12 }
 0x286   : > { %v4160_v7 = vsel %vm4102_vm9, %v4077_v24, 0.0  ;;  %v4078_v4 = vmul.f32 %v7013_v8, %v3826_v44  ;;  %v3827_v15 = vadd.f32 %v5277_v48, %v7011_v17  ;;  %v4275_v22 = vsel %vm4102_vm9, %v4229_v5, 0.0 }
 0x287   : > { %4117 = vst.msk [vmem:[%s7021_s26 + $0x70] sm:$0xff] %vm4102_vm9, %v4080_v2  ;;  %v4081_v60 = vmul.f32 %v7038_v55, %v3829_v62  ;;  %v4274_v6 = vadd.f32 %v4273_v35, %v4272_v36  ;;  %v4161_v14 = vadd.f32 %v4160_v7, %v4159_v28  ;;  %v4232_v55 = vmul.f32 %v4080_v2, %v4080_v2 }
 0x288   : > { %v5242_v45 = vpop.f32.mrb[16].mxu0  ;;  %4115 = vst.msk [vmem:[%s7021_s26 + $0x60] sm:$0xff] %vm4102_vm9, %v4078_v4  ;;  %v4162_v18 = vsel %vm4102_vm9, %v4078_v4, 0.0  ;;  %v4230_v42 = vmul.f32 %v4078_v4, %v4078_v4  ;;  %v4079_v3 = vmul.f32 %v7018_v51, %v3827_v15  ;;  %v4019_v4 = vpop.permute.xlu0 %4018 }
 0x289   : > { %v5278_v10 = vadd.f32 %v5242_v45, %v6998_v21  ;;  %v3692_v23 = vpop.f32.mrb[17].mxu0  ;;  %4118 = vst.msk [vmem:[%s7021_s26 + $0x78] sm:$0xff] %vm4102_vm9, %v4081_v60  ;;  %v4163_v33 = vadd.f32 %v4162_v18, %v4161_v14  ;;  %v4276_v53 = vadd.f32 %v4275_v22, %v4274_v6  ;;  %v7131_v21 = vpop.permute.xlu1 %4003  ;;  %v4233_v30 = vmul.f32 %v4081_v60, %v4081_v60 }
 0x28a   : > { %v5243_v8 = vpop.f32.mrb[18].mxu0  ;;  %v4277_v32 = vsel %vm4102_vm9, %v4230_v42, 0.0  ;;  %v5279_v29 = vadd.f32 %v3692_v23, %v7002_v25  ;;  %4116 = vst.msk [vmem:[%s7021_s26 + $0x68] sm:$0xff] %vm4102_vm9, %v4079_v3  ;;  %v4164_v50 = vsel %vm4102_vm9, %v4079_v3, 0.0  ;;  %v4231_v41 = vmul.f32 %v4079_v3, %v4079_v3 }
 0x28b   : > { %v3695_v31 = vpop.f32.mrb[19].mxu0  ;;  %v3832_v24 = vadd.f32 %v5278_v10, %v7011_v17  ;;  %v5280_v38 = vadd.f32 %v5243_v8, %v7004_v43  ;;  %v4278_v9 = vadd.f32 %v4277_v32, %v4276_v53  ;;  %v4165_v13 = vadd.f32 %v4164_v50, %v4163_v33 }
 0x28c   : > { %v5094_v61 = vpop.f32.mrb[20].mxu1  ;;  %v3830_v39 = vadd.f32 %v5279_v29, %v7011_v17  ;;  %v4166_v43 = vsel %vm4102_vm9, %v4080_v2, 0.0  ;;  %v4279_v11 = vsel %vm4102_vm9, %v4231_v41, 0.0  ;;  %v5281_v59 = vadd.f32 %v3695_v31, %v7006_v0 }
 0x28d   : > { %v2170_v47 = vpop.f32.mrb[21].mxu1  ;;  %v4084_v54 = vmul.f32 %v7071_v19, %v3832_v24  ;;  %v3833_v25 = vadd.f32 %v5280_v38, %v7011_v17  ;;  %v4281_v52 = vsel %vm4102_vm9, %v4232_v55, 0.0  ;;  %v4168_v34 = vsel %vm4102_vm9, %v4081_v60, 0.0  ;;  %v7155_v0 = vpop.permute.xlu1 %4013 }
 0x28e   : > { %v5095_v51 = vpop.f32.mrb[22].mxu1  ;;  %v4167_v58 = vadd.f32 %v4166_v43, %v4165_v13  ;;  %v4280_v16 = vadd.f32 %v4279_v11, %v4278_v9  ;;  %v4082_v49 = vmul.f32 %v7046_v26, %v3830_v39  ;;  %v3831_v5 = vadd.f32 %v5281_v59, %v7011_v17  ;;  %v7181_v13 = vpop.permute.xlu0 %4028 }
 0x28f   : > { %v2173_v57 = vpop.f32.mrb[23].mxu1  ;;  %4121 = vst.msk [vmem:[%s7021_s26 + $0x90] sm:$0xff] %vm4102_vm9, %v4084_v54  ;;  %v4085_v12 = vmul.f32 %v7085_v46, %v3833_v25  ;;  %v4283_v28 = vsel %vm4102_vm9, %v4233_v30, 0.0  ;;  %v4236_v36 = vmul.f32 %v4084_v54, %v4084_v54  ;;  %v4174_v24 = vsel %vm4102_vm9, %v4084_v54, 0.0 }
 0x290   : > { %v5246_v19 = vpop.f32.mrb[20].mxu0  ;;  %v4282_v2 = vadd.f32 %v4281_v52, %v4280_v16  ;;  %v4169_v44 = vadd.f32 %v4168_v34, %v4167_v58  ;;  %4119 = vst.msk [vmem:[%s7021_s26 + $0x80] sm:$0xff] %vm4102_vm9, %v4082_v49  ;;  %v4170_v35 = vsel %vm4102_vm9, %v4082_v49, 0.0  ;;  %v4234_v26 = vmul.f32 %v4082_v49, %v4082_v49 }
 0x291   : > { %v5282_v20 = vadd.f32 %v5246_v19, %v5094_v61  ;;  %v3708_v37 = vpop.f32.mrb[21].mxu0  ;;  %4122 = vst.msk [vmem:[%s7021_s26 + $0x98] sm:$0xff] %vm4102_vm9, %v4085_v12  ;;  %v4083_v6 = vmul.f32 %v7061_v56, %v3831_v5  ;;  %v4237_v23 = vmul.f32 %v4085_v12, %v4085_v12  ;;  %v4289_v29 = vsel %vm4102_vm9, %v4236_v36, 0.0  ;;  %v4024_v9 = vpop.permute.xlu1 %4023 }
 0x292   : > { %v5283_v62 = vadd.f32 %v3708_v37, %v2170_v47  ;;  %v5247_v48 = vpop.f32.mrb[22].mxu0  ;;  %v4171_v60 = vadd.f32 %v4170_v35, %v4169_v44  ;;  %v4284_v45 = vadd.f32 %v4283_v28, %v4282_v2  ;;  %v4285_v10 = vsel %vm4102_vm9, %v4234_v26, 0.0 }
 0x293   : > { %v3711_v46 = vpop.f32.mrb[23].mxu0  ;;  %v3836_v14 = vadd.f32 %v5282_v20, %v7011_v17  ;;  %v5284_v18 = vadd.f32 %v5247_v48, %v5095_v51  ;;  %4120 = vst.msk [vmem:[%s7021_s26 + $0x88] sm:$0xff] %vm4102_vm9, %v4083_v6  ;;  %v4172_v55 = vsel %vm4102_vm9, %v4083_v6, 0.0  ;;  %v4235_v33 = vmul.f32 %v4083_v6, %v4083_v6 }
 0x294   : > { %v5098_v7 = vpop.f32.mrb[24].mxu1  ;;  %v3834_v22 = vadd.f32 %v5283_v62, %v7011_v17  ;;  %v4286_v8 = vadd.f32 %v4285_v10, %v4284_v45  ;;  %v4173_v3 = vadd.f32 %v4172_v55, %v4171_v60  ;;  %v5285_v32 = vadd.f32 %v3711_v46, %v2173_v57  ;;  %v4039_v10 = vpop.permute.xlu0 %4038 }
 0x295   : > { %v2186_v15 = vpop.f32.mrb[25].mxu1  ;;  %v4088_v56 = vmul.f32 %v7114_v40, %v3836_v14  ;;  %v3837_v61 = vadd.f32 %v5284_v18, %v7011_v17  ;;  %v4287_v38 = vsel %vm4102_vm9, %v4235_v33, 0.0  ;;  %v4176_v50 = vsel %vm4102_vm9, %v4085_v12, 0.0 }
 0x296   : > { %v5099_v42 = vpop.f32.mrb[26].mxu1  ;;  %v4086_v31 = vmul.f32 %v7092_v1, %v3834_v22  ;;  %v4175_v40 = vadd.f32 %v4174_v24, %v4173_v3  ;;  %v4288_v41 = vadd.f32 %v4287_v38, %v4286_v8  ;;  %v3835_v25 = vadd.f32 %v5285_v32, %v7011_v17 }
 0x297   : > { %v2189_v53 = vpop.f32.mrb[27].mxu1  ;;  %4125 = vst.msk [vmem:[%s7021_s26 + $0xb0] sm:$0xff] %vm4102_vm9, %v4088_v56  ;;  %v4089_v39 = vmul.f32 %v7131_v21, %v3837_v61  ;;  %v4291_v30 = vsel %vm4102_vm9, %v4237_v23, 0.0  ;;  %v4240_v16 = vmul.f32 %v4088_v56, %v4088_v56  ;;  %v4182_v45 = vsel %vm4102_vm9, %v4088_v56, 0.0 }
 0x298   : > { %v5250_v47 = vpop.f32.mrb[24].mxu0  ;;  %4123 = vst.msk [vmem:[%s7021_s26 + $0xa0] sm:$0xff] %vm4102_vm9, %v4086_v31  ;;  %v4238_v1 = vmul.f32 %v4086_v31, %v4086_v31  ;;  %v4178_v54 = vsel %vm4102_vm9, %v4086_v31, 0.0  ;;  %v4290_v11 = vadd.f32 %v4289_v29, %v4288_v41  ;;  %v4177_v59 = vadd.f32 %v4176_v50, %v4175_v40 }
 0x299   : > { %v3724_v51 = vpop.f32.mrb[25].mxu0  ;;  %v5286_v57 = vadd.f32 %v5250_v47, %v5098_v7  ;;  %4126 = vst.msk [vmem:[%s7021_s26 + $0xb8] sm:$0xff] %vm4102_vm9, %v4089_v39  ;;  %v4087_v49 = vmul.f32 %v7108_v27, %v3835_v25  ;;  %v4241_v62 = vmul.f32 %v4089_v39, %v4089_v39  ;;  %v7196_v27 = vpop.permute.xlu1 %4033  ;;  %v4297_v6 = vsel %vm4102_vm9, %v4240_v16, 0.0 }
 0x29a   : > { %v5251_v43 = vpop.f32.mrb[26].mxu0  ;;  %v5287_v52 = vadd.f32 %v3724_v51, %v2186_v15  ;;  %v4293_v19 = vsel %vm4102_vm9, %v4238_v1, 0.0  ;;  %v4179_v5 = vadd.f32 %v4178_v54, %v4177_v59  ;;  %v4292_v20 = vadd.f32 %v4291_v30, %v4290_v11  ;;  %v4049_v59 = vpop.permute.xlu0 %4048 }
 0x29b   : > { %v3727_v34 = vpop.f32.mrb[27].mxu0  ;;  %v3840_v21 = vadd.f32 %v5286_v57, %v7011_v17  ;;  %v5288_v2 = vadd.f32 %v5251_v43, %v5099_v42  ;;  %4124 = vst.msk [vmem:[%s7021_s26 + $0xa8] sm:$0xff] %vm4102_vm9, %v4087_v49  ;;  %v4180_v48 = vsel %vm4102_vm9, %v4087_v49, 0.0  ;;  %v4239_v28 = vmul.f32 %v4087_v49, %v4087_v49 }
 0x29c   : > { %v5102_v58 = vpop.f32.mrb[28].mxu1  ;;  %v3838_v37 = vadd.f32 %v5287_v52, %v7011_v17  ;;  %v4294_v26 = vadd.f32 %v4293_v19, %v4292_v20  ;;  %v4181_v46 = vadd.f32 %v4180_v48, %v4179_v5  ;;  %v5289_v15 = vadd.f32 %v3727_v34, %v2189_v53 }
 0x29d   : > { %v2202_v12 = vpop.f32.mrb[29].mxu1  ;;  %v4092_v36 = vmul.f32 %v4019_v4, %v3840_v21  ;;  %v3841_v60 = vadd.f32 %v5288_v2, %v7011_v17  ;;  %v4295_v14 = vsel %vm4102_vm9, %v4239_v28, 0.0  ;;  %v4184_v23 = vsel %vm4102_vm9, %v4089_v39, 0.0  ;;  %v4044_v41 = vpop.permute.xlu1 %4043 }
 0x29e   : > { %v5103_v44 = vpop.f32.mrb[30].mxu1  ;;  %v4090_v7 = vmul.f32 %v7140_v63, %v3838_v37  ;;  %v4183_v22 = vadd.f32 %v4182_v45, %v4181_v46  ;;  %v4296_v18 = vadd.f32 %v4295_v14, %v4294_v26  ;;  %v3839_v33 = vadd.f32 %v5289_v15, %v7011_v17 }
 0x29f   : > { %v2205_v35 = vpop.f32.mrb[31].mxu1  ;;  %4129 = vst.msk [vmem:[%s7021_s26 + $0xd0] sm:$0xff] %vm4102_vm9, %v4092_v36  ;;  %v4093_v55 = vmul.f32 %v4024_v9, %v3841_v60  ;;  %v4299_v53 = vsel %vm4102_vm9, %v4241_v62, 0.0  ;;  %v4244_v38 = vmul.f32 %v4092_v36, %v4092_v36  ;;  %v4190_v19 = vsel %vm4102_vm9, %v4092_v36, 0.0 }
 0x2a0   : > { %v5254_v4 = vpop.f32.mrb[28].mxu0  ;;  %4127 = vst.msk [vmem:[%s7021_s26 + $0xc0] sm:$0xff] %vm4102_vm9, %v4090_v7  ;;  %v4242_v63 = vmul.f32 %v4090_v7, %v4090_v7  ;;  %v4186_v8 = vsel %vm4102_vm9, %v4090_v7, 0.0  ;;  %v4298_v31 = vadd.f32 %v4297_v6, %v4296_v18  ;;  %v4185_v61 = vadd.f32 %v4184_v23, %v4183_v22  ;;  %v4059_v23 = vpop.permute.xlu0 %4058 }
 0x2a1   : > { %v3740_v42 = vpop.f32.mrb[29].mxu0  ;;  %v5290_v56 = vadd.f32 %v5254_v4, %v5102_v58  ;;  %4130 = vst.msk [vmem:[%s7021_s26 + $0xd8] sm:$0xff] %vm4102_vm9, %v4093_v55  ;;  %v4091_v50 = vmul.f32 %v7155_v0, %v3839_v33  ;;  %v4245_v57 = vmul.f32 %v4093_v55, %v4093_v55  ;;  %v4305_v49 = vsel %vm4102_vm9, %v4244_v38, 0.0  ;;  %v4054_v46 = vpop.permute.xlu1 %4053 }
 0x2a2   : > { %v5255_v3 = vpop.f32.mrb[30].mxu0  ;;  %v5291_v32 = vadd.f32 %v3740_v42, %v2202_v12  ;;  %v4301_v47 = vsel %vm4102_vm9, %v4242_v63, 0.0  ;;  %v4187_v1 = vadd.f32 %v4186_v8, %v4185_v61  ;;  %v4300_v51 = vadd.f32 %v4299_v53, %v4298_v31 }
 0x2a3   : > { %v3743_v24 = vpop.f32.mrb[31].mxu0  ;;  %v3844_v9 = vadd.f32 %v5290_v56, %v7011_v17  ;;  %v5292_v39 = vadd.f32 %v5255_v3, %v5103_v44  ;;  %4128 = vst.msk [vmem:[%s7021_s26 + $0xc8] sm:$0xff] %vm4102_vm9, %v4091_v50  ;;  %v4188_v43 = vsel %vm4102_vm9, %v4091_v50, 0.0  ;;  %v4243_v30 = vmul.f32 %v4091_v50, %v4091_v50 }
 0x2a4   : > { %v5106_v29 = vpop.f32.mrb[32].mxu1  ;;  %v3842_v54 = vadd.f32 %v5291_v32, %v7011_v17  ;;  %v4302_v52 = vadd.f32 %v4301_v47, %v4300_v51  ;;  %v4189_v34 = vadd.f32 %v4188_v43, %v4187_v1  ;;  %v5293_v12 = vadd.f32 %v3743_v24, %v2205_v35 }
 0x2a5   : > { %v2218_v40 = vpop.f32.mrb[33].mxu1  ;;  %v4096_v11 = vmul.f32 %v4039_v10, %v3844_v9  ;;  %v3845_v16 = vadd.f32 %v5292_v39, %v7011_v17  ;;  %v4303_v21 = vsel %vm4102_vm9, %v4243_v30, 0.0  ;;  %v4192_v20 = vsel %vm4102_vm9, %v4093_v55, 0.0 }
 0x2a6   : > { %v5107_v25 = vpop.f32.mrb[34].mxu1  ;;  %v4094_v58 = vmul.f32 %v7181_v13, %v3842_v54  ;;  %v4191_v37 = vadd.f32 %v4190_v19, %v4189_v34  ;;  %v4304_v2 = vadd.f32 %v4303_v21, %v4302_v52  ;;  %v3843_v28 = vadd.f32 %v5293_v12, %v7011_v17 }
 0x2a7   : > { %v2221_v0 = vpop.f32.mrb[35].mxu1  ;;  %4133 = vst.msk [vmem:[%s7021_s26 + $0xf0] sm:$0xff] %vm4102_vm9, %v4096_v11  ;;  %v4097_v48 = vmul.f32 %v4044_v41, %v3845_v16  ;;  %v4307_v35 = vsel %vm4102_vm9, %v4245_v57, 0.0  ;;  %v4248_v14 = vmul.f32 %v4096_v11, %v4096_v11  ;;  %v4198_v31 = vsel %vm4102_vm9, %v4096_v11, 0.0 }
 0x2a8   : > { %v5258_v5 = vpop.f32.mrb[32].mxu0  ;;  %4131 = vst.msk [vmem:[%s7021_s26 + $0xe0] sm:$0xff] %vm4102_vm9, %v4094_v58  ;;  %v4246_v13 = vmul.f32 %v4094_v58, %v4094_v58  ;;  %v4194_v62 = vsel %vm4102_vm9, %v4094_v58, 0.0  ;;  %v4306_v7 = vadd.f32 %v4305_v49, %v4304_v2  ;;  %v4193_v60 = vadd.f32 %v4192_v20, %v4191_v37 }
 0x2a9   : > { %v3756_v44 = vpop.f32.mrb[33].mxu0  ;;  %v5294_v36 = vadd.f32 %v5258_v5, %v5106_v29  ;;  %4134 = vst.msk [vmem:[%s7021_s26 + $0xf8] sm:$0xff] %vm4102_vm9, %v4097_v48  ;;  %v4095_v4 = vmul.f32 %v7196_v27, %v3843_v28  ;;  %v4249_v61 = vmul.f32 %v4097_v48, %v4097_v48  ;;  %v4064_v29 = vpop.permute.xlu1 %4063  ;;  %v4313_v38 = vsel %vm4102_vm9, %v4248_v14, 0.0 }
 0x2aa   : > { %v5259_v26 = vpop.f32.mrb[34].mxu0  ;;  %v5295_v45 = vadd.f32 %v3756_v44, %v2218_v40  ;;  %v4309_v15 = vsel %vm4102_vm9, %v4246_v13, 0.0  ;;  %v4195_v22 = vadd.f32 %v4194_v62, %v4193_v60  ;;  %v4308_v18 = vadd.f32 %v4307_v35, %v4306_v7 }
 0x2ab   : > { %v3759_v6 = vpop.f32.mrb[35].mxu0  ;;  %v3848_v10 = vadd.f32 %v5294_v36, %v7011_v17  ;;  %v5296_v42 = vadd.f32 %v5259_v26, %v5107_v25  ;;  %4132 = vst.msk [vmem:[%s7021_s26 + $0xe8] sm:$0xff] %vm4102_vm9, %v4095_v4  ;;  %v4196_v8 = vsel %vm4102_vm9, %v4095_v4, 0.0  ;;  %v4247_v55 = vmul.f32 %v4095_v4, %v4095_v4 }
 0x2ac   : > { %v3846_v63 = vadd.f32 %v5295_v45, %v7011_v17  ;;  %v4310_v56 = vadd.f32 %v4309_v15, %v4308_v18  ;;  %v4197_v27 = vadd.f32 %v4196_v8, %v4195_v22  ;;  %v5297_v24 = vadd.f32 %v3759_v6, %v2221_v0 }
 0x2ad   : > { %v7242_v33 = vmul.f32 %v4059_v23, %v3848_v10  ;;  %v3849_v53 = vadd.f32 %v5296_v42, %v7011_v17  ;;  %v4311_v32 = vsel %vm4102_vm9, %v4247_v55, 0.0  ;;  %v4200_v40 = vsel %vm4102_vm9, %v4097_v48, 0.0 }
 0x2ae   : > { %v4098_v3 = vmul.f32 %v4049_v59, %v3846_v63  ;;  %v4199_v47 = vadd.f32 %v4198_v31, %v4197_v27  ;;  %v4312_v50 = vadd.f32 %v4311_v32, %v4310_v56  ;;  %v3847_v51 = vadd.f32 %v5297_v24, %v7011_v17 }
 0x2af   : > { %4137 = vst.msk [vmem:[%s7021_s26 + $0x110] sm:$0xff] %vm4102_vm9, %v7242_v33  ;;  %v4101_v1 = vmul.f32 %v4064_v29, %v3849_v53  ;;  %v4315_v25 = vsel %vm4102_vm9, %v4249_v61, 0.0  ;;  %v4252_v11 = vmul.f32 %v7242_v33, %v7242_v33 }
 0x2b0   : > { %4135 = vst.msk [vmem:[%s7021_s26 + $0x100] sm:$0xff] %vm4102_vm9, %v4098_v3  ;;  %v4250_v9 = vmul.f32 %v4098_v3, %v4098_v3  ;;  %v4202_v41 = vsel %vm4102_vm9, %v4098_v3, 0.0  ;;  %v4314_v54 = vadd.f32 %v4313_v38, %v4312_v50  ;;  %v4201_v39 = vadd.f32 %v4200_v40, %v4199_v47 }
 0x2b1   : > { %4138 = vst.msk [vmem:[%s7021_s26 + $0x118] sm:$0xff] %vm4102_vm9, %v4101_v1  ;;  %v4099_v43 = vmul.f32 %v4054_v46, %v3847_v51 }
 0x2b2   : > { %v4317_v57 = vsel %vm4102_vm9, %v4250_v9, 0.0  ;;  %v4203_v17 = vadd.f32 %v4202_v41, %v4201_v39  ;;  %v4316_v30 = vadd.f32 %v4315_v25, %v4314_v54 }
 0x2b3   : > { %4136 = vst.msk [vmem:[%s7021_s26 + $0x108] sm:$0xff] %vm4102_vm9, %v4099_v43  ;;  %v4204_v0 = vsel %vm4102_vm9, %v4099_v43, 0.0  ;;  %v4251_v59 = vmul.f32 %v4099_v43, %v4099_v43 }
 0x2b4   : > { %v4318_v52 = vadd.f32 %v4317_v57, %v4316_v30  ;;  %v4205_v34 = vadd.f32 %v4204_v0, %v4203_v17 }
 0x2b5   : > { %5854 = shalt.err (!%p5851_p4)
}
 0x2b6   : > { %s5855_s13 = scalar_lea.hbm %s7261_s30, 4608  ;;  %s5859_s24 = scalar_lea.hbm %s7357_s4, 9216 }
 0x2b7   : > { %p5856_p9 = scmp.ne.s32.totalorder %s7261_s30, %s5855_s13  ;;  %p5860_p8 = scmp.lt.u32.totalorder %s7261_s30, %s7357_s4 }
 0x2b8   : > { %p5861_p13 = scmp.lt.u32.totalorder %s5859_s24, %s5855_s13  ;;  %p5863_p10 = scmp.lt.u32.totalorder %s5855_s13, %s7261_s30 }
 0x2b9   : > { %p5857_p0 = pnand %p5856_p9, %p6142_p5 }
 0x2ba   : > { %p5862_p6 = por %p5861_p13, %p5860_p8 }
 0x2bb   : > { %p5858_p11 = pneg %p5857_p0 }
 0x2bc   : > { %p5864_p3 = por %p5863_p10, %p5862_p6 }
 0x2be   : > { %p5865_p7 = pnand %p5864_p3, %p5858_p11 }
 0x2c0   : > { %5868 = shalt.err (!%p5865_p7)
}
 0x2c1   : > { %s5960_s6 = smov 128   ;;  %s5961_s17 = smov 8   ;;  %v4206_v58 = vsel %vm4102_vm9, %v7242_v33, 0.0  ;;  %v4253_v16 = vmul.f32 %v4101_v1, %v4101_v1  ;;  %v4319_v19 = vsel %vm4102_vm9, %v4251_v59, 0.0  ;;  %v4321_v12 = vsel %vm4102_vm9, %v4252_v11, 0.0 }
 0x2c2   : > { %5569 = dma.vmem_to_hbm [thread:$0]  (%p6142_p5), %s7267_s15, 4608, %s7261_s30, %s4333_s29, %s5960_s6, %s5960_s6, %s5961_s17   ;;  %v4207_v49 = vadd.f32 %v4206_v58, %v4205_v34  ;;  %v4320_v21 = vadd.f32 %v4319_v19, %v4318_v52  ;;  %v4208_v5 = vsel %vm4102_vm9, %v4101_v1, 0.0  ;;  %vm4216_vm10 = vcmask 516096  }
 0x2c3   : > { %v4323_v2 = vsel %vm4102_vm9, %v4253_v16, 0.0  ;;  %s4509_s15 = sshll.u32 %s6193_s10, 1  ;;  %s4744_s30 = sshll.u32 %s6014_s22, 5 }
 0x2c4   : > { %v4209_v20 = vadd.f32 %v4208_v5, %v4207_v49  ;;  %v4322_v37 = vadd.f32 %v4321_v12, %v4320_v21  ;;  %s295_s29 = scalar_lea.vmem [#allocation11], %s4509_s15  ;;  %s7309_s9 = scalar_lea.hbm %s7358_s5, %s4744_s30 }
 0x2c5   : > { %s4367_s8 = sshll.u32 %s295_s29, 4  ;;  %s4338_s13 = scalar_lea.sflag [#allocation12], %s6193_s10  ;;  %s7311_s8 = int_to_ptr.vmem [resolvable:$true] %s4367_s8 }
 0x2c6   : > { %v4210_v13 = vrot.slane %v4209_v20, 4  ;;  %v4324_v44 = vadd.f32 %v4323_v2, %v4322_v37  ;;  %s5869_s16 = scalar_lea.vmem %s7311_s8, 32  ;;  %s5962_s22 = smov [#allocation11]  }
 0x2c7   : > { %p5870_p12 = scmp.ne.s32.totalorder %s7311_s8, %s5869_s16  ;;  %s5873_s28 = sshll.u32 %s5962_s22, 4  ;;  %s5874_s28 = int_to_ptr.vmem [resolvable:$false] %s5873_s28 }
 0x2c8   : > { %v4211_v62 = vadd.f32 %v4210_v13, %v4209_v20  ;;  %v4325_v48 = vrot.slane %v4324_v44, 4  ;;  %s5875_s24 = scalar_lea.vmem %s5874_s28, 64  ;;  %p5876_p4 = scmp.lt.s32.totalorder %s7311_s8, %s5874_s28 }
 0x2c9   : > { %p5871_p1 = pnand %p5870_p12, %p6142_p5  ;;  %p5877_p9 = scmp.lt.s32.totalorder %s5875_s24, %s5869_s16 }
 0x2ca   : > { %v4212_v28 = vrot.slane %v4211_v62, 2  ;;  %v4326_v36 = vadd.f32 %v4325_v48, %v4324_v44 }
 0x2cb   : > { %p5872_p2 = pneg %p5871_p1  ;;  %p5878_p0 = por %p5877_p9, %p5876_p4 }
 0x2cc   : > { %v4213_v26 = vadd.f32 %v4212_v28, %v4211_v62  ;;  %v4327_v46 = vrot.slane %v4326_v36, 2 }
 0x2cd   : > { %p5879_p11 = pnand %p5878_p0, %p5872_p2 }
 0x2ce   : > { %v4214_v35 = vrot.slane %v4213_v26, 1  ;;  %v4328_v7 = vadd.f32 %v4327_v46, %v4326_v36 }
 0x2d0   : > { %v4215_v60 = vadd.f32 %v4214_v35, %v4213_v26  ;;  %v4329_v45 = vrot.slane %v4328_v7, 1 }
 0x2d2   : > { %4217 = vst.msk [vmem:[%s295_s29] sm:$0x1] %vm4216_vm10, %v4215_v60  ;;  %v4330_v6 = vadd.f32 %v4329_v45, %v4328_v7 }
 0x2d4   : > { %4331 = vst.msk [vmem:[%s295_s29 + $0x1] sm:$0x1] %vm4216_vm10, %v4330_v6 }
 0x2d5   : > { %5882 = shalt.err (!%p5879_p11)
}
 0x2d6   : > { %s5883_s10 = scalar_lea.hbm %s7309_s9, 32  ;;  %s5887_s6 = scalar_lea.hbm %s7358_s5, 64 }
 0x2d7   : > { %p5884_p8 = scmp.ne.s32.totalorder %s7309_s9, %s5883_s10  ;;  %p5888_p10 = scmp.lt.u32.totalorder %s7309_s9, %s7358_s5 }
 0x2d8   : > { %p5889_p3 = scmp.lt.u32.totalorder %s5887_s6, %s5883_s10  ;;  %p5891_p12 = scmp.lt.u32.totalorder %s5883_s10, %s7309_s9 }
 0x2d9   : > { %p5885_p13 = pnand %p5884_p8, %p6142_p5 }
 0x2da   : > { %p5890_p7 = por %p5889_p3, %p5888_p10 }
 0x2db   : > { %p5886_p6 = pneg %p5885_p13 }
 0x2dc   : > { %p5892_p1 = por %p5891_p12, %p5890_p7 }
 0x2de   : > { %p5893_p2 = pnand %p5892_p1, %p5886_p6 }
 0x2e0   : > { %5896 = shalt.err (!%p5893_p2)
}
 0x2e1   : > { %5570 = dma.vmem_to_hbm [thread:$0]  (%p6142_p5), %s7311_s8, 32, %s7309_s9, %s4338_s13  }
 0x2e2 PF: > { %s4379_s30 = sand.u32 1, %s5935_s18   ;;  %p7378_p4 = scmp.ne.s32.totalorder %s7364_s25, 0 }
 0x2e3   : > { %p7379_p9 = scmp.ge.s32.totalorder %s5947_s21, 2  ;;  %s4380_s29 = scalar_lea.sflag [#allocation4], %s4379_s30 }
 0x2e5   : > { %p5588_p0 = pnand %p7379_p9, %p7378_p4 }
 0x2e7   : > { %5926 = dma.done.wait (!%p5588_p0), %s4380_s29, 4608  }
 0x2e8   : > { %5928 = vsyncadd (!%p5588_p0), %s4380_s29, 4294962688  ;;  %s4389_s14 = scalar_lea.sflag [#allocation12], %s4379_s30 }
 0x2e9   : > { %5930 = dma.done.wait (!%p5588_p0), %s4389_s14, 32  }
 0x2ea   : > { %5932 = vsyncadd (!%p5588_p0), %s4389_s14, 4294967264  ;;  %p24_p5 = scmp.ge.s32.totalorder %s6128_s7, 4   ;;  %s7380_s18 = smov %s5939_s19 }
 0x2eb   : > { %s7381_s19 = smov %s5943_s20  ;;  %s7382_s20 = smov %s6138_s11 }
 0x2ec   : > { %s7383_s21 = smov %s6128_s7  ;;  %26 = sbr.rel (!%p24_p5) target bundleno = 9 (0x9), region = 110 }
 0x2f3   :  { %4394 = vsyncpa [#allocation3], 1 }
 0x2f4   :  { %4396 = vsyncpa [#allocation3 + $0x1], 1 }
 0x2f5   :  { %4397 = vsyncpa [#allocation6], 1 }
 0x2f6   :  { %4398 = vsyncpa [#allocation9], 1 }
 0x2f7   :  { %4399 = vsyncpa [#allocation4], 1 }
 0x2f8   :  { %4401 = vsyncpa [#allocation4 + $0x1], 1 }
 0x2f9   :  { %4402 = vsyncpa [#allocation12], 1 }
 0x2fa   :  { %4404 = vsyncpa [#allocation12 + $0x1], 1 }

</bundles_post_ra>
